<compile_context>
chip_gen: v5e
topology: v5e:2x2
jax: 0.10.0
libtpu: 0.0.40
codegen_flags: <defaults>
</compile_context>

<pallas_src>
import functools
import math

import jax
import jax.numpy as jnp
from jax import lax
from jax.experimental import pallas as pl
from jax.experimental.pallas import tpu as pltpu

_LANE = 128


def _round_up(x, m):
    return (x + m - 1) // m * m


def _vmem_spec():
    return pl.BlockSpec(memory_space=pltpu.MemorySpace.VMEM)


# -----------------------------------------------------------------------------
# Fused kernel: 2 x (MHA graph-learner -> GraphConvolution) for text & price branches
#               + hidden Linear, all VMEM resident.
# -----------------------------------------------------------------------------
def _fused_graphlearner_kernel(*refs, num_layers, num_heads, d_k, d_k_pad):
    # per layer: text (wqk, bqk, wg, bg) + price (wqk, bqk, wg, bg) -> 8 weight refs per layer
    n_w = 8 * num_layers
    ex_ref, px_ref = refs[0], refs[1]
    layer_refs = refs[2:2 + n_w]
    wh_t_ref, wh_p_ref, bh_ref = refs[2 + n_w:5 + n_w]
    xt_out_ref, xp_out_ref, pred_out_ref = refs[5 + n_w:8 + n_w]

    scale = 1.0 / math.sqrt(d_k)          # scale uses the REAL d_k, not the padded one
    inv_heads = 1.0 / num_heads
    q_block = num_heads * d_k_pad         # lane offset of the K half inside the fused QK proj

    def mha_adj(x_bf, wqk_ref, bqk_ref):
        # Fused Q|K projection: one bf16 MXU matmul, f32 accumulation, f32 bias add.
        qk = jnp.dot(x_bf, wqk_ref[...], preferred_element_type=jnp.float32) + bqk_ref[...]
        qk_bf = qk.astype(jnp.bfloat16)
        n = qk.shape[0]
        adj = jnp.zeros((n, n), jnp.float32)
        for h in range(num_heads):                       # static unroll; slices are 128-lane aligned
            qh = qk_bf[:, h * d_k_pad:(h + 1) * d_k_pad]
            kh = qk_bf[:, q_block + h * d_k_pad:q_block + (h + 1) * d_k_pad]
            # Contract the last dims directly: no explicit transpose of kh.
            s = lax.dot_general(qh, kh, (((1,), (1,)), ((), ())),
                                preferred_element_type=jnp.float32) * scale
            s = s - jnp.max(s, axis=-1, keepdims=True)   # f32 softmax math
            e = jnp.exp(s)
            inv = pl.reciprocal(jnp.sum(e, axis=-1, keepdims=True), approx=True)
            adj = adj + e * inv
        return adj * inv_heads

    def gcn(adj, xg, xg_bf, wg_ref, bg_ref):
        ax = jnp.dot(adj.astype(jnp.bfloat16), xg_bf,
                     preferred_element_type=jnp.float32) + xg           # self loop in f32
        axw = jnp.dot(ax.astype(jnp.bfloat16), wg_ref[...],
                      preferred_element_type=jnp.float32) + bg_ref[...]
        # rowsum(adj) == 1 exactly (mean of softmax rows)  =>  denom == 2.0  =>  * 0.5
        return jnp.maximum(axw * 0.5, 0.0)

    x = ex_ref[...]                # text branch features (start: earningX, padded)
    x_price = x                    # price-branch propagated features (start: earningX)
    px_bf = px_ref[...].astype(jnp.bfloat16)   # price adjacency input (constant across layers)

    for i in range(num_layers):    # static unroll over layers
        (wqk_t, bqk_t, wg_t, bg_t,
         wqk_p, bqk_p, wg_p, bg_p) = layer_refs[8 * i:8 * (i + 1)]
        x_bf = x.astype(jnp.bfloat16)
        xp_bf = x_price.astype(jnp.bfloat16)
        adj_text = mha_adj(x_bf, wqk_t, bqk_t)
        adj_price = mha_adj(px_bf, wqk_p, bqk_p)
        x = gcn(adj_text, x, x_bf, wg_t, bg_t)
        x_price = gcn(adj_price, x_price, xp_bf, wg_p, bg_p)

    xt_out_ref[...] = x.astype(xt_out_ref.dtype)
    xp_out_ref[...] = x_price.astype(xp_out_ref.dtype)

    # Fused hidden Linear, emitted as a lane-dense [N, 128] slab (only column 0 is non-zero).
    pred = (jnp.dot(x.astype(jnp.bfloat16), wh_t_ref[...], preferred_element_type=jnp.float32)
            + jnp.dot(x_price.astype(jnp.bfloat16), wh_p_ref[...],
                      preferred_element_type=jnp.float32)
            + bh_ref[...])
    pred_out_ref[...] = pred.astype(pred_out_ref.dtype)


# -----------------------------------------------------------------------------
# Weight packing into padded / bf16 kernel layout (layout plumbing only, exact math).
# -----------------------------------------------------------------------------
def _pack_heads(w, b, d_in_pad, num_heads, d_k, d_k_pad):
    """Pack a Q or K projection so each head's d_k gets its own 128-lane slot."""
    d_in = w.shape[0]
    w_heads, b_heads = [], []
    for h in range(num_heads):
        wh = w[:, h * d_k:(h + 1) * d_k]
        bh = b[:, h * d_k:(h + 1) * d_k]
        w_heads.append(jnp.pad(wh, ((0, d_in_pad - d_in), (0, d_k_pad - d_k))))
        b_heads.append(jnp.pad(bh, ((0, 0), (0, d_k_pad - d_k))))
    return jnp.concatenate(w_heads, axis=1), jnp.concatenate(b_heads, axis=1)


def _pack_qk_fused(wq, bq, wk, bk, d_in_pad, num_heads, d_k, d_k_pad):
    """Fuse Q and K projections into one [d_in_pad, 2*H*d_k_pad] matmul (Q half | K half)."""
    wq_p, bq_p = _pack_heads(wq, bq, d_in_pad, num_heads, d_k, d_k_pad)
    wk_p, bk_p = _pack_heads(wk, bk, d_in_pad, num_heads, d_k, d_k_pad)
    w = jnp.concatenate([wq_p, wk_p], axis=1).astype(jnp.bfloat16)
    b = jnp.concatenate([bq_p, bk_p], axis=1).astype(jnp.float32)
    return w, b


def _pack_linear(w, b, d_in_pad, d_out_pad):
    w_pad = jnp.pad(w, ((0, d_in_pad - w.shape[0]), (0, d_out_pad - w.shape[1])))
    b_pad = jnp.pad(b, ((0, 0), (0, d_out_pad - b.shape[1])))
    return w_pad.astype(jnp.bfloat16), b_pad.astype(jnp.float32)


def _flop_estimate(n, in_dim, mem_dim, num_layers, num_heads):
    flops = 0
    for i in range(num_layers):
        din = in_dim if i == 0 else mem_dim
        # text branch: fused Q|K proj + per-head scores + adj@x + GCN linear
        flops += 2 * (2 * n * din * mem_dim) + 2 * n * n * mem_dim \
            + 2 * n * n * din + 2 * n * din * mem_dim
        # price branch: adjacency always built from the in_dim-wide priceX
        flops += 2 * (2 * n * in_dim * mem_dim) + 2 * n * n * mem_dim \
            + 2 * n * n * din + 2 * n * din * mem_dim
    flops += 2 * n * (2 * mem_dim)                               # hidden Linear
    transcendentals = num_layers * 2 * num_heads * n * n         # exp in the softmaxes
    return int(flops), int(transcendentals)


# -----------------------------------------------------------------------------
# Parameter construction (deterministic, torch-Linear-style uniform init)
# -----------------------------------------------------------------------------
def _init_linear(key, d_in, d_out):
    kw, kb = jax.random.split(key)
    bound = 1.0 / math.sqrt(d_in)
    w = jax.random.uniform(kw, (d_in, d_out), jnp.float32, -bound, bound)
    b = jax.random.uniform(kb, (1, d_out), jnp.float32, -bound, bound)
    return w, b


def init_graphlearner_params(key, in_dim, mem_dim, num_layers=2):
    keys = iter(jax.random.split(key, num_layers * 6 + 1))
    params = {"text_mha": [], "price_mha": [], "gcn_text": [], "gcn_price": []}
    for i in range(num_layers):
        din_text = in_dim if i == 0 else mem_dim
        wq, bq = _init_linear(next(keys), din_text, mem_dim)
        wk, bk = _init_linear(next(keys), din_text, mem_dim)
        params["text_mha"].append((wq, bq, wk, bk))
        wq, bq = _init_linear(next(keys), in_dim, mem_dim)     # priceX never changes dim
        wk, bk = _init_linear(next(keys), in_dim, mem_dim)
        params["price_mha"].append((wq, bq, wk, bk))
        params["gcn_text"].append(_init_linear(next(keys), din_text, mem_dim))
        params["gcn_price"].append(_init_linear(next(keys), din_text, mem_dim))
    params["hidden"] = _init_linear(next(keys), mem_dim * 2, 1)
    return params


# -----------------------------------------------------------------------------
# Graphlearner forward (single fused pallas_call)
# -----------------------------------------------------------------------------
def graphlearner_forward(params, x_, priceX, ratioX, Sea_priceX,
                         G_stock_earning, G_stock_earning_ratio, G_earning_ratio,
                         *, num_stock, num_layers=2, attention_heads=2):
    del ratioX, Sea_priceX, G_stock_earning, G_stock_earning_ratio, G_earning_ratio  # unused

    in_dim = x_.shape[1]
    mem_dim = params["hidden"][0].shape[0] // 2
    d_k = mem_dim // attention_heads

    in_pad = _round_up(in_dim, _LANE)
    mem_pad = _round_up(mem_dim, _LANE)
    d_k_pad = _round_up(d_k, _LANE)

    earningX = x_[num_stock:, :]
    priceX_e = priceX[num_stock:, :]
    n_e = earningX.shape[0]

    ex_pad = jnp.pad(earningX.astype(jnp.float32), ((0, 0), (0, in_pad - in_dim)))
    px_pad = jnp.pad(priceX_e.astype(jnp.float32), ((0, 0), (0, in_pad - in_dim)))

    # Pack every weight into the padded / bf16 kernel layout (in production, pack once).
    inputs = [ex_pad, px_pad]
    for i in range(num_layers):
        din_pad = in_pad if i == 0 else mem_pad
        wq, bq, wk, bk = params["text_mha"][i]
        inputs += [*_pack_qk_fused(wq, bq, wk, bk, din_pad, attention_heads, d_k, d_k_pad)]
        inputs += [*_pack_linear(*params["gcn_text"][i], din_pad, mem_pad)]
        wq, bq, wk, bk = params["price_mha"][i]
        inputs += [*_pack_qk_fused(wq, bq, wk, bk, in_pad, attention_heads, d_k, d_k_pad)]
        inputs += [*_pack_linear(*params["gcn_price"][i], din_pad, mem_pad)]
    wh, bh = params["hidden"]
    wh_t = jnp.pad(wh[:mem_dim], ((0, mem_pad - mem_dim), (0, _LANE - 1))).astype(jnp.bfloat16)
    wh_p = jnp.pad(wh[mem_dim:], ((0, mem_pad - mem_dim), (0, _LANE - 1))).astype(jnp.bfloat16)
    bh_p = jnp.pad(bh, ((0, 0), (0, _LANE - 1))).astype(jnp.float32)
    inputs += [wh_t, wh_p, bh_p]

    out_shapes = (jax.ShapeDtypeStruct((n_e, mem_pad), jnp.float32),   # text branch x
                  jax.ShapeDtypeStruct((n_e, mem_pad), jnp.float32),   # price branch x_price
                  jax.ShapeDtypeStruct((n_e, _LANE), jnp.float32))     # hidden(gc1), col 0 valid

    flops, transcend = _flop_estimate(n_e, in_dim, mem_dim, num_layers, attention_heads)
    bytes_acc = int(sum(a.size * a.dtype.itemsize for a in inputs)
                    + sum(math.prod(s.shape) * 4 for s in out_shapes))

    kern = functools.partial(_fused_graphlearner_kernel,
                             num_layers=num_layers, num_heads=attention_heads,
                             d_k=d_k, d_k_pad=d_k_pad)

    xt, xp, pred = pl.pallas_call(
        kern,
        out_shape=out_shapes,
        in_specs=[_vmem_spec() for _ in inputs],
        out_specs=(_vmem_spec(), _vmem_spec(), _vmem_spec()),
        cost_estimate=pl.CostEstimate(flops=flops, transcendentals=transcend,
                                      bytes_accessed=bytes_acc),
    )(*inputs)

    x_out = pred[:, :1]                                                 # [N_earn, 1]
    gc1 = jnp.concatenate([xt[:, :mem_dim], xp[:, :mem_dim]], axis=-1)  # [N_earn, 2*mem_dim]
    # NOTE: the dim-0 concat requires in_dim == 2*mem_dim (as in the original 200/100 config).
    gc1_out = jnp.concatenate([lax.stop_gradient(x_[:num_stock, :]),
                               lax.stop_gradient(gc1)], axis=0)
    return x_out, gc1_out


# -----------------------------------------------------------------------------
if __name__ == "__main__":
    in_dim = 32          # must equal 2*mem_dim for the final dim-0 concat (200/100 in the paper)
    mem_dim = 16
    attention_heads = 2
    num_layers = 2
    num_stock = 4
    num_earning = 8
    n_total = num_stock + num_earning

    key = jax.random.PRNGKey(0)
    k_par, k_x, k_p, k_s, k_r = jax.random.split(key, 5)

    params = init_graphlearner_params(k_par, in_dim, mem_dim, num_layers)

    x_ = jax.random.normal(k_x, (n_total, in_dim), jnp.float32)
    priceX = jax.random.normal(k_p, (n_total, in_dim), jnp.float32)
    Sea_priceX = jax.random.normal(k_s, (n_total, in_dim), jnp.float32)
    ratioX = jax.random.normal(k_r, (num_earning, in_dim), jnp.float32)
    G_stock_earning = jnp.ones((num_earning, num_earning), jnp.float32)
    G_stock_earning_ratio = jnp.ones((num_earning, num_earning), jnp.float32)
    G_earning_ratio = jnp.ones((num_earning, num_earning), jnp.float32)

    fwd = jax.jit(functools.partial(graphlearner_forward,
                                    num_stock=num_stock, num_layers=num_layers,
                                    attention_heads=attention_heads))
    x_out, gc1_out = fwd(params, x_, priceX, ratioX, Sea_priceX,
                         G_stock_earning, G_stock_earning_ratio, G_earning_ratio)
    jax.block_until_ready((x_out, gc1_out))

    assert x_out.shape == (num_earning, 1)
    assert gc1_out.shape == (n_total, mem_dim * 2)
    assert bool(jnp.all(jnp.isfinite(x_out))) and bool(jnp.all(jnp.isfinite(gc1_out)))
    print("KERNEL_OK")
</pallas_src>

<mosaic_0001>
module attributes {stable_mosaic.version = 11 : i64} {
  func.func @_fused_graphlearner_kernel(%arg0: memref<8x128xf32, #tpu.memory_space<vmem>>, %arg1: memref<8x128xf32, #tpu.memory_space<vmem>>, %arg2: memref<128x512xbf16, #tpu.memory_space<vmem>>, %arg3: memref<1x512xf32, #tpu.memory_space<vmem>>, %arg4: memref<128x128xbf16, #tpu.memory_space<vmem>>, %arg5: memref<1x128xf32, #tpu.memory_space<vmem>>, %arg6: memref<128x512xbf16, #tpu.memory_space<vmem>>, %arg7: memref<1x512xf32, #tpu.memory_space<vmem>>, %arg8: memref<128x128xbf16, #tpu.memory_space<vmem>>, %arg9: memref<1x128xf32, #tpu.memory_space<vmem>>, %arg10: memref<128x512xbf16, #tpu.memory_space<vmem>>, %arg11: memref<1x512xf32, #tpu.memory_space<vmem>>, %arg12: memref<128x128xbf16, #tpu.memory_space<vmem>>, %arg13: memref<1x128xf32, #tpu.memory_space<vmem>>, %arg14: memref<128x512xbf16, #tpu.memory_space<vmem>>, %arg15: memref<1x512xf32, #tpu.memory_space<vmem>>, %arg16: memref<128x128xbf16, #tpu.memory_space<vmem>>, %arg17: memref<1x128xf32, #tpu.memory_space<vmem>>, %arg18: memref<128x128xbf16, #tpu.memory_space<vmem>>, %arg19: memref<128x128xbf16, #tpu.memory_space<vmem>>, %arg20: memref<1x128xf32, #tpu.memory_space<vmem>>, %arg21: memref<8x128xf32, #tpu.memory_space<vmem>>, %arg22: memref<8x128xf32, #tpu.memory_space<vmem>>, %arg23: memref<8x128xf32, #tpu.memory_space<vmem>>) attributes {dimension_semantics = [], scalar_prefetch = 0 : i64, scratch_operands = 0 : i64, tpu.core_type = #tpu.core_type<tc>} {
    %c0 = arith.constant 0 : index
    %c0_0 = arith.constant 0 : index
    %0 = vector.load %arg0[%c0, %c0_0] : memref<8x128xf32, #tpu.memory_space<vmem>>, vector<8x128xf32>
    %c0_1 = arith.constant 0 : index
    %c0_2 = arith.constant 0 : index
    %1 = vector.load %arg1[%c0_1, %c0_2] : memref<8x128xf32, #tpu.memory_space<vmem>>, vector<8x128xf32>
    %2 = arith.truncf %1 : vector<8x128xf32> to vector<8x128xbf16>
    %3 = arith.truncf %0 : vector<8x128xf32> to vector<8x128xbf16>
    %4 = arith.truncf %0 : vector<8x128xf32> to vector<8x128xbf16>
    %c0_3 = arith.constant 0 : index
    %c0_4 = arith.constant 0 : index
    %5 = vector.load %arg2[%c0_3, %c0_4] : memref<128x512xbf16, #tpu.memory_space<vmem>>, vector<128x512xbf16>
    %cst = arith.constant dense<0.000000e+00> : vector<8x512xf32>
    %6 = tpu.matmul %3, %5, %cst {dimension_numbers = #tpu.dot_dimension_numbers<[1], [0], [0], [1], [0, 0, 1, 1], [], []>} : vector<8x128xbf16>, vector<128x512xbf16>, vector<8x512xf32> -> vector<8x512xf32>
    %c0_5 = arith.constant 0 : index
    %c0_6 = arith.constant 0 : index
    %7 = vector.load %arg3[%c0_5, %c0_6] : memref<1x512xf32, #tpu.memory_space<vmem>>, vector<1x512xf32>
    %8 = vector.broadcast %7 : vector<1x512xf32> to vector<8x512xf32>
    %9 = arith.addf %6, %8 : vector<8x512xf32>
    %10 = arith.truncf %9 : vector<8x512xf32> to vector<8x512xbf16>
    %cst_7 = arith.constant 0.000000e+00 : f32
    %11 = vector.broadcast %cst_7 : f32 to vector<8x8xf32>
    %12 = vector.extract_strided_slice %10 {offsets = [0, 0], sizes = [8, 128], strides = [1, 1]} : vector<8x512xbf16> to vector<8x128xbf16>
    %13 = vector.extract_strided_slice %10 {offsets = [0, 256], sizes = [8, 128], strides = [1, 1]} : vector<8x512xbf16> to vector<8x128xbf16>
    %cst_8 = arith.constant dense<0.000000e+00> : vector<8x8xf32>
    %14 = tpu.matmul %12, %13, %cst_8 {dimension_numbers = #tpu.dot_dimension_numbers<[1], [1], [0], [0], [0, 0, 1, 0], [], []>} : vector<8x128xbf16>, vector<8x128xbf16>, vector<8x8xf32> -> vector<8x8xf32>
    %cst_9 = arith.constant 0.353553385 : f32
    %15 = vector.broadcast %cst_9 : f32 to vector<8x8xf32>
    %16 = arith.mulf %14, %15 : vector<8x8xf32>
    %cst_10 = arith.constant dense<0xFF800000> : vector<8xf32>
    %17 = vector.multi_reduction <maximumf>, %16, %cst_10 [1] : vector<8x8xf32> to vector<8xf32>
    %18 = vector.shape_cast %17 : vector<8xf32> to vector<8x1xf32>
    %19 = vector.broadcast %18 : vector<8x1xf32> to vector<8x8xf32>
    %20 = arith.subf %16, %19 : vector<8x8xf32>
    %21 = math.exp %20 : vector<8x8xf32>
    %cst_11 = arith.constant dense<0.000000e+00> : vector<8xf32>
    %22 = vector.multi_reduction <add>, %21, %cst_11 [1] : vector<8x8xf32> to vector<8xf32>
    %23 = vector.shape_cast %22 : vector<8xf32> to vector<8x1xf32>
    %24 = tpu.reciprocal %23 {approx = true} : vector<8x1xf32> -> vector<8x1xf32>
    %25 = vector.broadcast %24 : vector<8x1xf32> to vector<8x8xf32>
    %26 = arith.mulf %21, %25 : vector<8x8xf32>
    %27 = arith.addf %11, %26 : vector<8x8xf32>
    %28 = vector.extract_strided_slice %10 {offsets = [0, 128], sizes = [8, 128], strides = [1, 1]} : vector<8x512xbf16> to vector<8x128xbf16>
    %29 = vector.extract_strided_slice %10 {offsets = [0, 384], sizes = [8, 128], strides = [1, 1]} : vector<8x512xbf16> to vector<8x128xbf16>
    %cst_12 = arith.constant dense<0.000000e+00> : vector<8x8xf32>
    %30 = tpu.matmul %28, %29, %cst_12 {dimension_numbers = #tpu.dot_dimension_numbers<[1], [1], [0], [0], [0, 0, 1, 0], [], []>} : vector<8x128xbf16>, vector<8x128xbf16>, vector<8x8xf32> -> vector<8x8xf32>
    %cst_13 = arith.constant 0.353553385 : f32
    %31 = vector.broadcast %cst_13 : f32 to vector<8x8xf32>
    %32 = arith.mulf %30, %31 : vector<8x8xf32>
    %cst_14 = arith.constant dense<0xFF800000> : vector<8xf32>
    %33 = vector.multi_reduction <maximumf>, %32, %cst_14 [1] : vector<8x8xf32> to vector<8xf32>
    %34 = vector.shape_cast %33 : vector<8xf32> to vector<8x1xf32>
    %35 = vector.broadcast %34 : vector<8x1xf32> to vector<8x8xf32>
    %36 = arith.subf %32, %35 : vector<8x8xf32>
    %37 = math.exp %36 : vector<8x8xf32>
    %cst_15 = arith.constant dense<0.000000e+00> : vector<8xf32>
    %38 = vector.multi_reduction <add>, %37, %cst_15 [1] : vector<8x8xf32> to vector<8xf32>
    %39 = vector.shape_cast %38 : vector<8xf32> to vector<8x1xf32>
    %40 = tpu.reciprocal %39 {approx = true} : vector<8x1xf32> -> vector<8x1xf32>
    %41 = vector.broadcast %40 : vector<8x1xf32> to vector<8x8xf32>
    %42 = arith.mulf %37, %41 : vector<8x8xf32>
    %43 = arith.addf %27, %42 : vector<8x8xf32>
    %cst_16 = arith.constant 5.000000e-01 : f32
    %44 = vector.broadcast %cst_16 : f32 to vector<8x8xf32>
    %45 = arith.mulf %43, %44 : vector<8x8xf32>
    %c0_17 = arith.constant 0 : index
    %c0_18 = arith.constant 0 : index
    %46 = vector.load %arg6[%c0_17, %c0_18] : memref<128x512xbf16, #tpu.memory_space<vmem>>, vector<128x512xbf16>
    %cst_19 = arith.constant dense<0.000000e+00> : vector<8x512xf32>
    %47 = tpu.matmul %2, %46, %cst_19 {dimension_numbers = #tpu.dot_dimension_numbers<[1], [0], [0], [1], [0, 0, 1, 1], [], []>} : vector<8x128xbf16>, vector<128x512xbf16>, vector<8x512xf32> -> vector<8x512xf32>
    %c0_20 = arith.constant 0 : index
    %c0_21 = arith.constant 0 : index
    %48 = vector.load %arg7[%c0_20, %c0_21] : memref<1x512xf32, #tpu.memory_space<vmem>>, vector<1x512xf32>
    %49 = vector.broadcast %48 : vector<1x512xf32> to vector<8x512xf32>
    %50 = arith.addf %47, %49 : vector<8x512xf32>
    %51 = arith.truncf %50 : vector<8x512xf32> to vector<8x512xbf16>
    %cst_22 = arith.constant 0.000000e+00 : f32
    %52 = vector.broadcast %cst_22 : f32 to vector<8x8xf32>
    %53 = vector.extract_strided_slice %51 {offsets = [0, 0], sizes = [8, 128], strides = [1, 1]} : vector<8x512xbf16> to vector<8x128xbf16>
    %54 = vector.extract_strided_slice %51 {offsets = [0, 256], sizes = [8, 128], strides = [1, 1]} : vector<8x512xbf16> to vector<8x128xbf16>
    %cst_23 = arith.constant dense<0.000000e+00> : vector<8x8xf32>
    %55 = tpu.matmul %53, %54, %cst_23 {dimension_numbers = #tpu.dot_dimension_numbers<[1], [1], [0], [0], [0, 0, 1, 0], [], []>} : vector<8x128xbf16>, vector<8x128xbf16>, vector<8x8xf32> -> vector<8x8xf32>
    %cst_24 = arith.constant 0.353553385 : f32
    %56 = vector.broadcast %cst_24 : f32 to vector<8x8xf32>
    %57 = arith.mulf %55, %56 : vector<8x8xf32>
    %cst_25 = arith.constant dense<0xFF800000> : vector<8xf32>
    %58 = vector.multi_reduction <maximumf>, %57, %cst_25 [1] : vector<8x8xf32> to vector<8xf32>
    %59 = vector.shape_cast %58 : vector<8xf32> to vector<8x1xf32>
    %60 = vector.broadcast %59 : vector<8x1xf32> to vector<8x8xf32>
    %61 = arith.subf %57, %60 : vector<8x8xf32>
    %62 = math.exp %61 : vector<8x8xf32>
    %cst_26 = arith.constant dense<0.000000e+00> : vector<8xf32>
    %63 = vector.multi_reduction <add>, %62, %cst_26 [1] : vector<8x8xf32> to vector<8xf32>
    %64 = vector.shape_cast %63 : vector<8xf32> to vector<8x1xf32>
    %65 = tpu.reciprocal %64 {approx = true} : vector<8x1xf32> -> vector<8x1xf32>
    %66 = vector.broadcast %65 : vector<8x1xf32> to vector<8x8xf32>
    %67 = arith.mulf %62, %66 : vector<8x8xf32>
    %68 = arith.addf %52, %67 : vector<8x8xf32>
    %69 = vector.extract_strided_slice %51 {offsets = [0, 128], sizes = [8, 128], strides = [1, 1]} : vector<8x512xbf16> to vector<8x128xbf16>
    %70 = vector.extract_strided_slice %51 {offsets = [0, 384], sizes = [8, 128], strides = [1, 1]} : vector<8x512xbf16> to vector<8x128xbf16>
    %cst_27 = arith.constant dense<0.000000e+00> : vector<8x8xf32>
    %71 = tpu.matmul %69, %70, %cst_27 {dimension_numbers = #tpu.dot_dimension_numbers<[1], [1], [0], [0], [0, 0, 1, 0], [], []>} : vector<8x128xbf16>, vector<8x128xbf16>, vector<8x8xf32> -> vector<8x8xf32>
    %cst_28 = arith.constant 0.353553385 : f32
    %72 = vector.broadcast %cst_28 : f32 to vector<8x8xf32>
    %73 = arith.mulf %71, %72 : vector<8x8xf32>
    %cst_29 = arith.constant dense<0xFF800000> : vector<8xf32>
    %74 = vector.multi_reduction <maximumf>, %73, %cst_29 [1] : vector<8x8xf32> to vector<8xf32>
    %75 = vector.shape_cast %74 : vector<8xf32> to vector<8x1xf32>
    %76 = vector.broadcast %75 : vector<8x1xf32> to vector<8x8xf32>
    %77 = arith.subf %73, %76 : vector<8x8xf32>
    %78 = math.exp %77 : vector<8x8xf32>
    %cst_30 = arith.constant dense<0.000000e+00> : vector<8xf32>
    %79 = vector.multi_reduction <add>, %78, %cst_30 [1] : vector<8x8xf32> to vector<8xf32>
    %80 = vector.shape_cast %79 : vector<8xf32> to vector<8x1xf32>
    %81 = tpu.reciprocal %80 {approx = true} : vector<8x1xf32> -> vector<8x1xf32>
    %82 = vector.broadcast %81 : vector<8x1xf32> to vector<8x8xf32>
    %83 = arith.mulf %78, %82 : vector<8x8xf32>
    %84 = arith.addf %68, %83 : vector<8x8xf32>
    %cst_31 = arith.constant 5.000000e-01 : f32
    %85 = vector.broadcast %cst_31 : f32 to vector<8x8xf32>
    %86 = arith.mulf %84, %85 : vector<8x8xf32>
    %87 = arith.truncf %45 : vector<8x8xf32> to vector<8x8xbf16>
    %cst_32 = arith.constant dense<0.000000e+00> : vector<8x128xf32>
    %88 = tpu.matmul %87, %3, %cst_32 {dimension_numbers = #tpu.dot_dimension_numbers<[1], [0], [0], [1], [0, 0, 1, 1], [], []>} : vector<8x8xbf16>, vector<8x128xbf16>, vector<8x128xf32> -> vector<8x128xf32>
    %89 = arith.addf %88, %0 : vector<8x128xf32>
    %90 = arith.truncf %89 : vector<8x128xf32> to vector<8x128xbf16>
    %c0_33 = arith.constant 0 : index
    %c0_34 = arith.constant 0 : index
    %91 = vector.load %arg4[%c0_33, %c0_34] : memref<128x128xbf16, #tpu.memory_space<vmem>>, vector<128x128xbf16>
    %cst_35 = arith.constant dense<0.000000e+00> : vector<8x128xf32>
    %92 = tpu.matmul %90, %91, %cst_35 {dimension_numbers = #tpu.dot_dimension_numbers<[1], [0], [0], [1], [0, 0, 1, 1], [], []>} : vector<8x128xbf16>, vector<128x128xbf16>, vector<8x128xf32> -> vector<8x128xf32>
    %c0_36 = arith.constant 0 : index
    %c0_37 = arith.constant 0 : index
    %93 = vector.load %arg5[%c0_36, %c0_37] : memref<1x128xf32, #tpu.memory_space<vmem>>, vector<1x128xf32>
    %94 = vector.broadcast %93 : vector<1x128xf32> to vector<8x128xf32>
    %95 = arith.addf %92, %94 : vector<8x128xf32>
    %cst_38 = arith.constant 5.000000e-01 : f32
    %96 = vector.broadcast %cst_38 : f32 to vector<8x128xf32>
    %97 = arith.mulf %95, %96 : vector<8x128xf32>
    %cst_39 = arith.constant 0.000000e+00 : f32
    %98 = vector.broadcast %cst_39 : f32 to vector<8x128xf32>
    %99 = arith.maximumf %97, %98 : vector<8x128xf32>
    %100 = arith.truncf %86 : vector<8x8xf32> to vector<8x8xbf16>
    %cst_40 = arith.constant dense<0.000000e+00> : vector<8x128xf32>
    %101 = tpu.matmul %100, %4, %cst_40 {dimension_numbers = #tpu.dot_dimension_numbers<[1], [0], [0], [1], [0, 0, 1, 1], [], []>} : vector<8x8xbf16>, vector<8x128xbf16>, vector<8x128xf32> -> vector<8x128xf32>
    %102 = arith.addf %101, %0 : vector<8x128xf32>
    %103 = arith.truncf %102 : vector<8x128xf32> to vector<8x128xbf16>
    %c0_41 = arith.constant 0 : index
    %c0_42 = arith.constant 0 : index
    %104 = vector.load %arg8[%c0_41, %c0_42] : memref<128x128xbf16, #tpu.memory_space<vmem>>, vector<128x128xbf16>
    %cst_43 = arith.constant dense<0.000000e+00> : vector<8x128xf32>
    %105 = tpu.matmul %103, %104, %cst_43 {dimension_numbers = #tpu.dot_dimension_numbers<[1], [0], [0], [1], [0, 0, 1, 1], [], []>} : vector<8x128xbf16>, vector<128x128xbf16>, vector<8x128xf32> -> vector<8x128xf32>
    %c0_44 = arith.constant 0 : index
    %c0_45 = arith.constant 0 : index
    %106 = vector.load %arg9[%c0_44, %c0_45] : memref<1x128xf32, #tpu.memory_space<vmem>>, vector<1x128xf32>
    %107 = vector.broadcast %106 : vector<1x128xf32> to vector<8x128xf32>
    %108 = arith.addf %105, %107 : vector<8x128xf32>
    %cst_46 = arith.constant 5.000000e-01 : f32
    %109 = vector.broadcast %cst_46 : f32 to vector<8x128xf32>
    %110 = arith.mulf %108, %109 : vector<8x128xf32>
    %cst_47 = arith.constant 0.000000e+00 : f32
    %111 = vector.broadcast %cst_47 : f32 to vector<8x128xf32>
    %112 = arith.maximumf %110, %111 : vector<8x128xf32>
    %113 = arith.truncf %99 : vector<8x128xf32> to vector<8x128xbf16>
    %114 = arith.truncf %112 : vector<8x128xf32> to vector<8x128xbf16>
    %c0_48 = arith.constant 0 : index
    %c0_49 = arith.constant 0 : index
    %115 = vector.load %arg10[%c0_48, %c0_49] : memref<128x512xbf16, #tpu.memory_space<vmem>>, vector<128x512xbf16>
    %cst_50 = arith.constant dense<0.000000e+00> : vector<8x512xf32>
    %116 = tpu.matmul %113, %115, %cst_50 {dimension_numbers = #tpu.dot_dimension_numbers<[1], [0], [0], [1], [0, 0, 1, 1], [], []>} : vector<8x128xbf16>, vector<128x512xbf16>, vector<8x512xf32> -> vector<8x512xf32>
    %c0_51 = arith.constant 0 : index
    %c0_52 = arith.constant 0 : index
    %117 = vector.load %arg11[%c0_51, %c0_52] : memref<1x512xf32, #tpu.memory_space<vmem>>, vector<1x512xf32>
    %118 = vector.broadcast %117 : vector<1x512xf32> to vector<8x512xf32>
    %119 = arith.addf %116, %118 : vector<8x512xf32>
    %120 = arith.truncf %119 : vector<8x512xf32> to vector<8x512xbf16>
    %cst_53 = arith.constant 0.000000e+00 : f32
    %121 = vector.broadcast %cst_53 : f32 to vector<8x8xf32>
    %122 = vector.extract_strided_slice %120 {offsets = [0, 0], sizes = [8, 128], strides = [1, 1]} : vector<8x512xbf16> to vector<8x128xbf16>
    %123 = vector.extract_strided_slice %120 {offsets = [0, 256], sizes = [8, 128], strides = [1, 1]} : vector<8x512xbf16> to vector<8x128xbf16>
    %cst_54 = arith.constant dense<0.000000e+00> : vector<8x8xf32>
    %124 = tpu.matmul %122, %123, %cst_54 {dimension_numbers = #tpu.dot_dimension_numbers<[1], [1], [0], [0], [0, 0, 1, 0], [], []>} : vector<8x128xbf16>, vector<8x128xbf16>, vector<8x8xf32> -> vector<8x8xf32>
    %cst_55 = arith.constant 0.353553385 : f32
    %125 = vector.broadcast %cst_55 : f32 to vector<8x8xf32>
    %126 = arith.mulf %124, %125 : vector<8x8xf32>
    %cst_56 = arith.constant dense<0xFF800000> : vector<8xf32>
    %127 = vector.multi_reduction <maximumf>, %126, %cst_56 [1] : vector<8x8xf32> to vector<8xf32>
    %128 = vector.shape_cast %127 : vector<8xf32> to vector<8x1xf32>
    %129 = vector.broadcast %128 : vector<8x1xf32> to vector<8x8xf32>
    %130 = arith.subf %126, %129 : vector<8x8xf32>
    %131 = math.exp %130 : vector<8x8xf32>
    %cst_57 = arith.constant dense<0.000000e+00> : vector<8xf32>
    %132 = vector.multi_reduction <add>, %131, %cst_57 [1] : vector<8x8xf32> to vector<8xf32>
    %133 = vector.shape_cast %132 : vector<8xf32> to vector<8x1xf32>
    %134 = tpu.reciprocal %133 {approx = true} : vector<8x1xf32> -> vector<8x1xf32>
    %135 = vector.broadcast %134 : vector<8x1xf32> to vector<8x8xf32>
    %136 = arith.mulf %131, %135 : vector<8x8xf32>
    %137 = arith.addf %121, %136 : vector<8x8xf32>
    %138 = vector.extract_strided_slice %120 {offsets = [0, 128], sizes = [8, 128], strides = [1, 1]} : vector<8x512xbf16> to vector<8x128xbf16>
    %139 = vector.extract_strided_slice %120 {offsets = [0, 384], sizes = [8, 128], strides = [1, 1]} : vector<8x512xbf16> to vector<8x128xbf16>
    %cst_58 = arith.constant dense<0.000000e+00> : vector<8x8xf32>
    %140 = tpu.matmul %138, %139, %cst_58 {dimension_numbers = #tpu.dot_dimension_numbers<[1], [1], [0], [0], [0, 0, 1, 0], [], []>} : vector<8x128xbf16>, vector<8x128xbf16>, vector<8x8xf32> -> vector<8x8xf32>
    %cst_59 = arith.constant 0.353553385 : f32
    %141 = vector.broadcast %cst_59 : f32 to vector<8x8xf32>
    %142 = arith.mulf %140, %141 : vector<8x8xf32>
    %cst_60 = arith.constant dense<0xFF800000> : vector<8xf32>
    %143 = vector.multi_reduction <maximumf>, %142, %cst_60 [1] : vector<8x8xf32> to vector<8xf32>
    %144 = vector.shape_cast %143 : vector<8xf32> to vector<8x1xf32>
    %145 = vector.broadcast %144 : vector<8x1xf32> to vector<8x8xf32>
    %146 = arith.subf %142, %145 : vector<8x8xf32>
    %147 = math.exp %146 : vector<8x8xf32>
    %cst_61 = arith.constant dense<0.000000e+00> : vector<8xf32>
    %148 = vector.multi_reduction <add>, %147, %cst_61 [1] : vector<8x8xf32> to vector<8xf32>
    %149 = vector.shape_cast %148 : vector<8xf32> to vector<8x1xf32>
    %150 = tpu.reciprocal %149 {approx = true} : vector<8x1xf32> -> vector<8x1xf32>
    %151 = vector.broadcast %150 : vector<8x1xf32> to vector<8x8xf32>
    %152 = arith.mulf %147, %151 : vector<8x8xf32>
    %153 = arith.addf %137, %152 : vector<8x8xf32>
    %cst_62 = arith.constant 5.000000e-01 : f32
    %154 = vector.broadcast %cst_62 : f32 to vector<8x8xf32>
    %155 = arith.mulf %153, %154 : vector<8x8xf32>
    %c0_63 = arith.constant 0 : index
    %c0_64 = arith.constant 0 : index
    %156 = vector.load %arg14[%c0_63, %c0_64] : memref<128x512xbf16, #tpu.memory_space<vmem>>, vector<128x512xbf16>
    %cst_65 = arith.constant dense<0.000000e+00> : vector<8x512xf32>
    %157 = tpu.matmul %2, %156, %cst_65 {dimension_numbers = #tpu.dot_dimension_numbers<[1], [0], [0], [1], [0, 0, 1, 1], [], []>} : vector<8x128xbf16>, vector<128x512xbf16>, vector<8x512xf32> -> vector<8x512xf32>
    %c0_66 = arith.constant 0 : index
    %c0_67 = arith.constant 0 : index
    %158 = vector.load %arg15[%c0_66, %c0_67] : memref<1x512xf32, #tpu.memory_space<vmem>>, vector<1x512xf32>
    %159 = vector.broadcast %158 : vector<1x512xf32> to vector<8x512xf32>
    %160 = arith.addf %157, %159 : vector<8x512xf32>
    %161 = arith.truncf %160 : vector<8x512xf32> to vector<8x512xbf16>
    %cst_68 = arith.constant 0.000000e+00 : f32
    %162 = vector.broadcast %cst_68 : f32 to vector<8x8xf32>
    %163 = vector.extract_strided_slice %161 {offsets = [0, 0], sizes = [8, 128], strides = [1, 1]} : vector<8x512xbf16> to vector<8x128xbf16>
    %164 = vector.extract_strided_slice %161 {offsets = [0, 256], sizes = [8, 128], strides = [1, 1]} : vector<8x512xbf16> to vector<8x128xbf16>
    %cst_69 = arith.constant dense<0.000000e+00> : vector<8x8xf32>
    %165 = tpu.matmul %163, %164, %cst_69 {dimension_numbers = #tpu.dot_dimension_numbers<[1], [1], [0], [0], [0, 0, 1, 0], [], []>} : vector<8x128xbf16>, vector<8x128xbf16>, vector<8x8xf32> -> vector<8x8xf32>
    %cst_70 = arith.constant 0.353553385 : f32
    %166 = vector.broadcast %cst_70 : f32 to vector<8x8xf32>
    %167 = arith.mulf %165, %166 : vector<8x8xf32>
    %cst_71 = arith.constant dense<0xFF800000> : vector<8xf32>
    %168 = vector.multi_reduction <maximumf>, %167, %cst_71 [1] : vector<8x8xf32> to vector<8xf32>
    %169 = vector.shape_cast %168 : vector<8xf32> to vector<8x1xf32>
    %170 = vector.broadcast %169 : vector<8x1xf32> to vector<8x8xf32>
    %171 = arith.subf %167, %170 : vector<8x8xf32>
    %172 = math.exp %171 : vector<8x8xf32>
    %cst_72 = arith.constant dense<0.000000e+00> : vector<8xf32>
    %173 = vector.multi_reduction <add>, %172, %cst_72 [1] : vector<8x8xf32> to vector<8xf32>
    %174 = vector.shape_cast %173 : vector<8xf32> to vector<8x1xf32>
    %175 = tpu.reciprocal %174 {approx = true} : vector<8x1xf32> -> vector<8x1xf32>
    %176 = vector.broadcast %175 : vector<8x1xf32> to vector<8x8xf32>
    %177 = arith.mulf %172, %176 : vector<8x8xf32>
    %178 = arith.addf %162, %177 : vector<8x8xf32>
    %179 = vector.extract_strided_slice %161 {offsets = [0, 128], sizes = [8, 128], strides = [1, 1]} : vector<8x512xbf16> to vector<8x128xbf16>
    %180 = vector.extract_strided_slice %161 {offsets = [0, 384], sizes = [8, 128], strides = [1, 1]} : vector<8x512xbf16> to vector<8x128xbf16>
    %cst_73 = arith.constant dense<0.000000e+00> : vector<8x8xf32>
    %181 = tpu.matmul %179, %180, %cst_73 {dimension_numbers = #tpu.dot_dimension_numbers<[1], [1], [0], [0], [0, 0, 1, 0], [], []>} : vector<8x128xbf16>, vector<8x128xbf16>, vector<8x8xf32> -> vector<8x8xf32>
    %cst_74 = arith.constant 0.353553385 : f32
    %182 = vector.broadcast %cst_74 : f32 to vector<8x8xf32>
    %183 = arith.mulf %181, %182 : vector<8x8xf32>
    %cst_75 = arith.constant dense<0xFF800000> : vector<8xf32>
    %184 = vector.multi_reduction <maximumf>, %183, %cst_75 [1] : vector<8x8xf32> to vector<8xf32>
    %185 = vector.shape_cast %184 : vector<8xf32> to vector<8x1xf32>
    %186 = vector.broadcast %185 : vector<8x1xf32> to vector<8x8xf32>
    %187 = arith.subf %183, %186 : vector<8x8xf32>
    %188 = math.exp %187 : vector<8x8xf32>
    %cst_76 = arith.constant dense<0.000000e+00> : vector<8xf32>
    %189 = vector.multi_reduction <add>, %188, %cst_76 [1] : vector<8x8xf32> to vector<8xf32>
    %190 = vector.shape_cast %189 : vector<8xf32> to vector<8x1xf32>
    %191 = tpu.reciprocal %190 {approx = true} : vector<8x1xf32> -> vector<8x1xf32>
    %192 = vector.broadcast %191 : vector<8x1xf32> to vector<8x8xf32>
    %193 = arith.mulf %188, %192 : vector<8x8xf32>
    %194 = arith.addf %178, %193 : vector<8x8xf32>
    %cst_77 = arith.constant 5.000000e-01 : f32
    %195 = vector.broadcast %cst_77 : f32 to vector<8x8xf32>
    %196 = arith.mulf %194, %195 : vector<8x8xf32>
    %197 = arith.truncf %155 : vector<8x8xf32> to vector<8x8xbf16>
    %cst_78 = arith.constant dense<0.000000e+00> : vector<8x128xf32>
    %198 = tpu.matmul %197, %113, %cst_78 {dimension_numbers = #tpu.dot_dimension_numbers<[1], [0], [0], [1], [0, 0, 1, 1], [], []>} : vector<8x8xbf16>, vector<8x128xbf16>, vector<8x128xf32> -> vector<8x128xf32>
    %199 = arith.addf %198, %99 : vector<8x128xf32>
    %200 = arith.truncf %199 : vector<8x128xf32> to vector<8x128xbf16>
    %c0_79 = arith.constant 0 : index
    %c0_80 = arith.constant 0 : index
    %201 = vector.load %arg12[%c0_79, %c0_80] : memref<128x128xbf16, #tpu.memory_space<vmem>>, vector<128x128xbf16>
    %cst_81 = arith.constant dense<0.000000e+00> : vector<8x128xf32>
    %202 = tpu.matmul %200, %201, %cst_81 {dimension_numbers = #tpu.dot_dimension_numbers<[1], [0], [0], [1], [0, 0, 1, 1], [], []>} : vector<8x128xbf16>, vector<128x128xbf16>, vector<8x128xf32> -> vector<8x128xf32>
    %c0_82 = arith.constant 0 : index
    %c0_83 = arith.constant 0 : index
    %203 = vector.load %arg13[%c0_82, %c0_83] : memref<1x128xf32, #tpu.memory_space<vmem>>, vector<1x128xf32>
    %204 = vector.broadcast %203 : vector<1x128xf32> to vector<8x128xf32>
    %205 = arith.addf %202, %204 : vector<8x128xf32>
    %cst_84 = arith.constant 5.000000e-01 : f32
    %206 = vector.broadcast %cst_84 : f32 to vector<8x128xf32>
    %207 = arith.mulf %205, %206 : vector<8x128xf32>
    %cst_85 = arith.constant 0.000000e+00 : f32
    %208 = vector.broadcast %cst_85 : f32 to vector<8x128xf32>
    %209 = arith.maximumf %207, %208 : vector<8x128xf32>
    %210 = arith.truncf %196 : vector<8x8xf32> to vector<8x8xbf16>
    %cst_86 = arith.constant dense<0.000000e+00> : vector<8x128xf32>
    %211 = tpu.matmul %210, %114, %cst_86 {dimension_numbers = #tpu.dot_dimension_numbers<[1], [0], [0], [1], [0, 0, 1, 1], [], []>} : vector<8x8xbf16>, vector<8x128xbf16>, vector<8x128xf32> -> vector<8x128xf32>
    %212 = arith.addf %211, %112 : vector<8x128xf32>
    %213 = arith.truncf %212 : vector<8x128xf32> to vector<8x128xbf16>
    %c0_87 = arith.constant 0 : index
    %c0_88 = arith.constant 0 : index
    %214 = vector.load %arg16[%c0_87, %c0_88] : memref<128x128xbf16, #tpu.memory_space<vmem>>, vector<128x128xbf16>
    %cst_89 = arith.constant dense<0.000000e+00> : vector<8x128xf32>
    %215 = tpu.matmul %213, %214, %cst_89 {dimension_numbers = #tpu.dot_dimension_numbers<[1], [0], [0], [1], [0, 0, 1, 1], [], []>} : vector<8x128xbf16>, vector<128x128xbf16>, vector<8x128xf32> -> vector<8x128xf32>
    %c0_90 = arith.constant 0 : index
    %c0_91 = arith.constant 0 : index
    %216 = vector.load %arg17[%c0_90, %c0_91] : memref<1x128xf32, #tpu.memory_space<vmem>>, vector<1x128xf32>
    %217 = vector.broadcast %216 : vector<1x128xf32> to vector<8x128xf32>
    %218 = arith.addf %215, %217 : vector<8x128xf32>
    %cst_92 = arith.constant 5.000000e-01 : f32
    %219 = vector.broadcast %cst_92 : f32 to vector<8x128xf32>
    %220 = arith.mulf %218, %219 : vector<8x128xf32>
    %cst_93 = arith.constant 0.000000e+00 : f32
    %221 = vector.broadcast %cst_93 : f32 to vector<8x128xf32>
    %222 = arith.maximumf %220, %221 : vector<8x128xf32>
    %c0_94 = arith.constant 0 : index
    %c0_95 = arith.constant 0 : index
    %223 = vector.load %arg21[%c0_94, %c0_95] : memref<8x128xf32, #tpu.memory_space<vmem>>, vector<8x128xf32>
    tpu.vector_store %arg21[%c0_94, %c0_95], %209 {strides = array<i32>} : memref<8x128xf32, #tpu.memory_space<vmem>>, vector<8x128xf32>,
    %c0_96 = arith.constant 0 : index
    %c0_97 = arith.constant 0 : index
    %224 = vector.load %arg22[%c0_96, %c0_97] : memref<8x128xf32, #tpu.memory_space<vmem>>, vector<8x128xf32>
    tpu.vector_store %arg22[%c0_96, %c0_97], %222 {strides = array<i32>} : memref<8x128xf32, #tpu.memory_space<vmem>>, vector<8x128xf32>,
    %225 = arith.truncf %209 : vector<8x128xf32> to vector<8x128xbf16>
    %c0_98 = arith.constant 0 : index
    %c0_99 = arith.constant 0 : index
    %226 = vector.load %arg18[%c0_98, %c0_99] : memref<128x128xbf16, #tpu.memory_space<vmem>>, vector<128x128xbf16>
    %cst_100 = arith.constant dense<0.000000e+00> : vector<8x128xf32>
    %227 = tpu.matmul %225, %226, %cst_100 {dimension_numbers = #tpu.dot_dimension_numbers<[1], [0], [0], [1], [0, 0, 1, 1], [], []>} : vector<8x128xbf16>, vector<128x128xbf16>, vector<8x128xf32> -> vector<8x128xf32>
    %228 = arith.truncf %222 : vector<8x128xf32> to vector<8x128xbf16>
    %c0_101 = arith.constant 0 : index
    %c0_102 = arith.constant 0 : index
    %229 = vector.load %arg19[%c0_101, %c0_102] : memref<128x128xbf16, #tpu.memory_space<vmem>>, vector<128x128xbf16>
    %cst_103 = arith.constant dense<0.000000e+00> : vector<8x128xf32>
    %230 = tpu.matmul %228, %229, %cst_103 {dimension_numbers = #tpu.dot_dimension_numbers<[1], [0], [0], [1], [0, 0, 1, 1], [], []>} : vector<8x128xbf16>, vector<128x128xbf16>, vector<8x128xf32> -> vector<8x128xf32>
    %231 = arith.addf %227, %230 : vector<8x128xf32>
    %c0_104 = arith.constant 0 : index
    %c0_105 = arith.constant 0 : index
    %232 = vector.load %arg20[%c0_104, %c0_105] : memref<1x128xf32, #tpu.memory_space<vmem>>, vector<1x128xf32>
    %233 = vector.broadcast %232 : vector<1x128xf32> to vector<8x128xf32>
    %234 = arith.addf %231, %233 : vector<8x128xf32>
    %c0_106 = arith.constant 0 : index
    %c0_107 = arith.constant 0 : index
    %235 = vector.load %arg23[%c0_106, %c0_107] : memref<8x128xf32, #tpu.memory_space<vmem>>, vector<8x128xf32>
    tpu.vector_store %arg23[%c0_106, %c0_107], %234 {strides = array<i32>} : memref<8x128xf32, #tpu.memory_space<vmem>>, vector<8x128xf32>,
    return
  }
}

</mosaic_0001>

<bundles_post_ra>
// kernel: graphlearner_forward.1
= control target key start
LH: loop header
LB: loop body
LE: loop exit
PB: predicated region body
PF: predicated region fallthrough
CT: control target
= control target key end

     0   :  { %vm346_vm0 = vcmask 64512   ;;  %vm715_vm1 = vcmask 1043456   ;;  %s4015_s2 = inlined_call_operand.vmem [shape: bf16[128,512], index: 2, kind: input, shape index: {}]   ;;  %s4016_s0 = inlined_call_operand.vmem [shape: f32[8,128], index: 0, kind: input, shape index: {}]   ;;  %s4017_s6 = inlined_call_operand.vmem [shape: bf16[128,512], index: 6, kind: input, shape index: {}]   ;;  %s4018_s3 = inlined_call_operand.vmem [shape: f32[1,512], index: 3, kind: input, shape index: {}]   ;;  %s4019_s1 = inlined_call_operand.vmem [shape: f32[8,128], index: 1, kind: input, shape index: {}]   ;;  %s4020_s7 = inlined_call_operand.vmem [shape: f32[1,512], index: 7, kind: input, shape index: {}]   ;;  %s4021_s4 = inlined_call_operand.vmem [shape: bf16[128,128], index: 4, kind: input, shape index: {}]   ;;  %s4022_s5 = inlined_call_operand.vmem [shape: f32[1,128], index: 5, kind: input, shape index: {}]   ;;  %s4023_s10 = inlined_call_operand.vmem [shape: bf16[128,512], index: 10, kind: input, shape index: {}]   ;;  %s4024_s8 = inlined_call_operand.vmem [shape: bf16[128,128], index: 8, kind: input, shape index: {}]   ;;  %s4025_s9 = inlined_call_operand.vmem [shape: f32[1,128], index: 9, kind: input, shape index: {}]   ;;  %s4026_s14 = inlined_call_operand.vmem [shape: bf16[128,512], index: 14, kind: input, shape index: {}]   ;;  %s4027_s11 = inlined_call_operand.vmem [shape: f32[1,512], index: 11, kind: input, shape index: {}]   ;;  %s4028_s15 = inlined_call_operand.vmem [shape: f32[1,512], index: 15, kind: input, shape index: {}]   ;;  %s4029_s12 = inlined_call_operand.vmem [shape: bf16[128,128], index: 12, kind: input, shape index: {}]   ;;  %s4030_s16 = inlined_call_operand.vmem [shape: bf16[128,128], index: 16, kind: input, shape index: {}]   ;;  %s4031_s18 = inlined_call_operand.vmem [shape: bf16[128,128], index: 18, kind: input, shape index: {}]   ;;  %s4032_s13 = inlined_call_operand.vmem [shape: f32[1,128], index: 13, kind: input, shape index: {}]   ;;  %s4033_s17 = inlined_call_operand.vmem [shape: f32[1,128], index: 17, kind: input, shape index: {}]   ;;  %s4034_s19 = inlined_call_operand.vmem [shape: bf16[128,128], index: 19, kind: input, shape index: {}]   ;;  %s4035_s21 = inlined_call_operand.vmem [shape: f32[8,128], index: 21, kind: output, shape index: {0}]   ;;  %s4036_s20 = inlined_call_operand.vmem [shape: f32[1,128], index: 20, kind: input, shape index: {}]   ;;  %s4037_s22 = inlined_call_operand.vmem [shape: f32[8,128], index: 22, kind: output, shape index: {1}]   ;;  %s4038_s23 = inlined_call_operand.vmem [shape: f32[8,128], index: 23, kind: output, shape index: {2}]  }
   0x1   :  { %4042 = sst [smem:[#allocation2_spill]] %s4015_s2 }
   0x2   :  { %4043 = sst [smem:[#allocation3_spill]] %s4016_s0 }
   0x3   :  { %4044 = sst [smem:[#allocation4_spill]] %s4017_s6 }
   0x4   :  { %4045 = sst [smem:[#allocation5_spill]] %s4018_s3 }
   0x5   :  { %4046 = sst [smem:[#allocation6_spill]] %s4019_s1 }
   0x6   :  { %4047 = sst [smem:[#allocation7_spill]] %s4020_s7 }
   0x7   :  { %4048 = sst [smem:[#allocation8_spill]] %s4021_s4 }
   0x8   :  { %4049 = sst [smem:[#allocation9_spill]] %s4022_s5 }
   0x9   :  { %s4050_s24 = sld [smem:[#allocation2_spill]] }
   0xa   :  { %s4051_s28 = sld [smem:[#allocation3_spill]] }
   0xb   :  { %s4052_s6 = sld [smem:[#allocation4_spill]] }
   0xc   :  { %s4053_s7 = sld [smem:[#allocation5_spill]] }
   0xd   :  { %s4054_s0 = sld [smem:[#allocation6_spill]] }
   0xe   :  { %s4055_s1 = sld [smem:[#allocation7_spill]] }
   0xf   :  { %v2059_v0 = vld [vmem:[%s4050_s24 + $0xe8] sm:$0xf]  ;;  %v2676_v1 = vld [vmem:[%s4050_s24 + $0xf4] sm:$0xf0]  ;;  %v2674_v2 = vld [vmem:[%s4050_s24 + $0xec] sm:$0xf] }
  0x10   :  { %v2060_v3 = vor.u32 %v2676_v1, %v2059_v0  ;;  %v2061_v4 = vld [vmem:[%s4050_s24 + $0xf8] sm:$0xf0]  ;;  %v2043_v5 = vld [vmem:[%s4050_s24 + $0xc8] sm:$0xf]  ;;  %v2672_v6 = vld [vmem:[%s4050_s24 + $0xd4] sm:$0xf0] }
  0x11   :  { %v2064_v7 = vor.u32 %v2674_v2, %v2061_v4  ;;  %v2670_v8 = vld [vmem:[%s4050_s24 + $0xcc] sm:$0xf]  ;;  %v2045_v9 = vld [vmem:[%s4050_s24 + $0xd8] sm:$0xf0]  ;;  %v2044_v10 = vor.u32 %v2672_v6, %v2043_v5  ;;  %v2027_v12 = vld [vmem:[%s4050_s24 + $0xa8] sm:$0xf] }
  0x12   :  { %304 = vmatpush.bf16.msra.mxu2 %v2060_v3  ;;  %v2048_v11 = vor.u32 %v2670_v8, %v2045_v9  ;;  %v2668_v13 = vld [vmem:[%s4050_s24 + $0xb4] sm:$0xf0]  ;;  %v2666_v14 = vld [vmem:[%s4050_s24 + $0xac] sm:$0xf]  ;;  %v2029_v15 = vld [vmem:[%s4050_s24 + $0xb8] sm:$0xf0] }
  0x13   :  { %317 = vmatpush.bf16.msra.mxu3 %v2064_v7  ;;  %v2051_v16 = vld [vmem:[%s4050_s24 + $0xe0] sm:$0xf]  ;;  %v2675_v17 = vld [vmem:[%s4050_s24 + $0xec] sm:$0xf0]  ;;  %v2673_v19 = vld [vmem:[%s4050_s24 + $0xe4] sm:$0xf]  ;;  %v2028_v21 = vor.u32 %v2668_v13, %v2027_v12  ;;  %v2032_v25 = vor.u32 %v2666_v14, %v2029_v15 }
  0x14   :  { %v2052_v18 = vor.u32 %v2675_v17, %v2051_v16  ;;  %v2053_v20 = vld [vmem:[%s4050_s24 + $0xf0] sm:$0xf0]  ;;  %v2011_v22 = vld [vmem:[%s4050_s24 + $0x88] sm:$0xf]  ;;  %v2664_v23 = vld [vmem:[%s4050_s24 + $0x94] sm:$0xf0] }
  0x15   :  { %v2056_v24 = vor.u32 %v2673_v19, %v2053_v20  ;;  %v2035_v26 = vld [vmem:[%s4050_s24 + $0xc0] sm:$0xf]  ;;  %v2671_v27 = vld [vmem:[%s4050_s24 + $0xcc] sm:$0xf0]  ;;  %v2669_v28 = vld [vmem:[%s4050_s24 + $0xc4] sm:$0xf]  ;;  %v2012_v35 = vor.u32 %v2664_v23, %v2011_v22 }
  0x16   :  { %305 = vmatpush.bf16.msra.mxu2 %v2044_v10  ;;  %278 = vmatpush.bf16.msra.mxu0 %v2052_v18  ;;  %v2662_v29 = vld [vmem:[%s4050_s24 + $0x8c] sm:$0xf]  ;;  %v2013_v30 = vld [vmem:[%s4050_s24 + $0x98] sm:$0xf0]  ;;  %v2036_v31 = vor.u32 %v2671_v27, %v2035_v26  ;;  %v2037_v32 = vld [vmem:[%s4050_s24 + $0xd0] sm:$0xf0] }
  0x17   :  { %318 = vmatpush.bf16.msra.mxu3 %v2048_v11  ;;  %291 = vmatpush.bf16.msra.mxu1 %v2056_v24  ;;  %v2040_v33 = vor.u32 %v2669_v28, %v2037_v32  ;;  %v2019_v34 = vld [vmem:[%s4050_s24 + $0xa0] sm:$0xf]  ;;  %v2667_v36 = vld [vmem:[%s4050_s24 + $0xac] sm:$0xf0]  ;;  %v2665_v37 = vld [vmem:[%s4050_s24 + $0xa4] sm:$0xf]  ;;  %v2016_v39 = vor.u32 %v2662_v29, %v2013_v30 }
  0x18   :  { %v2021_v38 = vld [vmem:[%s4050_s24 + $0xb0] sm:$0xf0]  ;;  %v1995_v40 = vld [vmem:[%s4050_s24 + $0x68] sm:$0xf]  ;;  %v2660_v41 = vld [vmem:[%s4050_s24 + $0x74] sm:$0xf0]  ;;  %v2020_v43 = vor.u32 %v2667_v36, %v2019_v34 }
  0x19   :  { %v2658_v42 = vld [vmem:[%s4050_s24 + $0x6c] sm:$0xf]  ;;  %v1997_v44 = vld [vmem:[%s4050_s24 + $0x78] sm:$0xf0]  ;;  %v2024_v45 = vor.u32 %v2665_v37, %v2021_v38  ;;  %v2003_v46 = vld [vmem:[%s4050_s24 + $0x80] sm:$0xf]  ;;  %v1996_v50 = vor.u32 %v2660_v41, %v1995_v40 }
  0x1a   :  { %306 = vmatpush.bf16.msra.mxu2 %v2028_v21  ;;  %279 = vmatpush.bf16.msra.mxu0 %v2036_v31  ;;  %v2663_v47 = vld [vmem:[%s4050_s24 + $0x8c] sm:$0xf0]  ;;  %v2661_v48 = vld [vmem:[%s4050_s24 + $0x84] sm:$0xf]  ;;  %v2005_v49 = vld [vmem:[%s4050_s24 + $0x90] sm:$0xf0]  ;;  %v2000_v51 = vor.u32 %v2658_v42, %v1997_v44 }
  0x1b   :  { %319 = vmatpush.bf16.msra.mxu3 %v2032_v25  ;;  %292 = vmatpush.bf16.msra.mxu1 %v2040_v33  ;;  %v1979_v52 = vld [vmem:[%s4050_s24 + $0x48] sm:$0xf]  ;;  %v2656_v53 = vld [vmem:[%s4050_s24 + $0x54] sm:$0xf0]  ;;  %v2654_v54 = vld [vmem:[%s4050_s24 + $0x4c] sm:$0xf]  ;;  %v2004_v55 = vor.u32 %v2663_v47, %v2003_v46  ;;  %v2008_v57 = vor.u32 %v2661_v48, %v2005_v49 }
  0x1c   :  { %v1981_v56 = vld [vmem:[%s4050_s24 + $0x58] sm:$0xf0]  ;;  %v1987_v58 = vld [vmem:[%s4050_s24 + $0x60] sm:$0xf]  ;;  %v2659_v59 = vld [vmem:[%s4050_s24 + $0x6c] sm:$0xf0]  ;;  %v1980_v62 = vor.u32 %v2656_v53, %v1979_v52 }
  0x1d   :  { %v2657_v60 = vld [vmem:[%s4050_s24 + $0x64] sm:$0xf]  ;;  %v1989_v61 = vld [vmem:[%s4050_s24 + $0x70] sm:$0xf0]  ;;  %v1984_v63 = vor.u32 %v2654_v54, %v1981_v56  ;;  %v1963_v0 = vld [vmem:[%s4050_s24 + $0x28] sm:$0xf]  ;;  %v1988_v3 = vor.u32 %v2659_v59, %v1987_v58 }
  0x1e   :  { %307 = vmatpush.bf16.msra.mxu2 %v2012_v35  ;;  %280 = vmatpush.bf16.msra.mxu0 %v2020_v43  ;;  %v2652_v1 = vld [vmem:[%s4050_s24 + $0x34] sm:$0xf0]  ;;  %v2650_v2 = vld [vmem:[%s4050_s24 + $0x2c] sm:$0xf]  ;;  %v1965_v4 = vld [vmem:[%s4050_s24 + $0x38] sm:$0xf0]  ;;  %v1992_v5 = vor.u32 %v2657_v60, %v1989_v61 }
  0x1f   :  { %320 = vmatpush.bf16.msra.mxu3 %v2016_v39  ;;  %293 = vmatpush.bf16.msra.mxu1 %v2024_v45  ;;  %v1971_v6 = vld [vmem:[%s4050_s24 + $0x40] sm:$0xf]  ;;  %v2655_v7 = vld [vmem:[%s4050_s24 + $0x4c] sm:$0xf0]  ;;  %v2653_v8 = vld [vmem:[%s4050_s24 + $0x44] sm:$0xf]  ;;  %v1964_v10 = vor.u32 %v2652_v1, %v1963_v0  ;;  %v1968_v11 = vor.u32 %v2650_v2, %v1965_v4 }
  0x20   :  { %v1973_v9 = vld [vmem:[%s4050_s24 + $0x50] sm:$0xf0]  ;;  %v1947_v12 = vld [vmem:[%s4050_s24 + $0x8] sm:$0xf]  ;;  %v2648_v13 = vld [vmem:[%s4050_s24 + $0x14] sm:$0xf0]  ;;  %v1972_v15 = vor.u32 %v2655_v7, %v1971_v6 }
  0x21   :  { %v2646_v14 = vld [vmem:[%s4050_s24 + $0xc] sm:$0xf]  ;;  %v1949_v16 = vld [vmem:[%s4050_s24 + $0x18] sm:$0xf0]  ;;  %v1976_v17 = vor.u32 %v2653_v8, %v1973_v9  ;;  %v1955_v18 = vld [vmem:[%s4050_s24 + $0x20] sm:$0xf]  ;;  %v1948_v22 = vor.u32 %v2648_v13, %v1947_v12 }
  0x22   :  { %308 = vmatpush.bf16.msra.mxu2 %v1996_v50  ;;  %281 = vmatpush.bf16.msra.mxu0 %v2004_v55  ;;  %v2651_v19 = vld [vmem:[%s4050_s24 + $0x2c] sm:$0xf0]  ;;  %v2649_v20 = vld [vmem:[%s4050_s24 + $0x24] sm:$0xf]  ;;  %v1957_v21 = vld [vmem:[%s4050_s24 + $0x30] sm:$0xf0]  ;;  %v1952_v24 = vor.u32 %v2646_v14, %v1949_v16 }
  0x23   :  { %321 = vmatpush.bf16.msra.mxu3 %v2000_v51  ;;  %294 = vmatpush.bf16.msra.mxu1 %v2008_v57  ;;  %v3161_v23 = vld [vmem:[%s4051_s28] sm:$0xff]  ;;  %v1956_v25 = vor.u32 %v2651_v19, %v1955_v18  ;;  %v1960_v26 = vor.u32 %v2649_v20, %v1957_v21  ;;  %v2647_v28 = vld [vmem:[%s4050_s24 + $0xc] sm:$0xf0]  ;;  %v1941_v31 = vld [vmem:[%s4050_s24 + $0x10] sm:$0xf0]  ;;  %s4057_s30 = sld [smem:[#allocation9_spill]] }
  0x24   :  { %v1939_v27 = vld [vmem:[%s4050_s24] sm:$0xf]  ;;  %v3171_v29 = vpack.c.bf16 %v3161_v23, %v3161_v23  ;;  %v2645_v30 = vld [vmem:[%s4050_s24 + $0x4] sm:$0xf]  ;;  %v2187_v34 = vld [vmem:[%s4052_s6 + $0xe8] sm:$0xf] }
  0x25   :  { %v1940_v32 = vor.u32 %v2647_v28, %v1939_v27  ;;  %v1944_v33 = vor.u32 %v2645_v30, %v1941_v31  ;;  %v2708_v35 = vld [vmem:[%s4052_s6 + $0xf4] sm:$0xf0]  ;;  %v2179_v37 = vld [vmem:[%s4052_s6 + $0xe0] sm:$0xf]  ;;  %v2707_v38 = vld [vmem:[%s4052_s6 + $0xec] sm:$0xf0] }
  0x26   :  { %309 = vmatpush.bf16.msra.mxu2 %v1980_v62  ;;  %282 = vmatpush.bf16.msra.mxu0 %v1988_v3  ;;  %v2188_v36 = vor.u32 %v2708_v35, %v2187_v34  ;;  %v2180_v39 = vor.u32 %v2707_v38, %v2179_v37  ;;  %v2171_v40 = vld [vmem:[%s4052_s6 + $0xc8] sm:$0xf]  ;;  %v2704_v41 = vld [vmem:[%s4052_s6 + $0xd4] sm:$0xf0]  ;;  %v2163_v42 = vld [vmem:[%s4052_s6 + $0xc0] sm:$0xf] }
  0x27   :  { %322 = vmatpush.bf16.msra.mxu3 %v1984_v63  ;;  %295 = vmatpush.bf16.msra.mxu1 %v1992_v5  ;;  %v2703_v43 = vld [vmem:[%s4052_s6 + $0xcc] sm:$0xf0]  ;;  %v2172_v44 = vor.u32 %v2704_v41, %v2171_v40  ;;  %v2155_v46 = vld [vmem:[%s4052_s6 + $0xa8] sm:$0xf]  ;;  %v2700_v47 = vld [vmem:[%s4052_s6 + $0xb4] sm:$0xf0] }
  0x28   :  { %v2164_v45 = vor.u32 %v2703_v43, %v2163_v42  ;;  %v2156_v48 = vor.u32 %v2700_v47, %v2155_v46  ;;  %v2147_v49 = vld [vmem:[%s4052_s6 + $0xa0] sm:$0xf]  ;;  %v2699_v50 = vld [vmem:[%s4052_s6 + $0xac] sm:$0xf0]  ;;  %v2139_v52 = vld [vmem:[%s4052_s6 + $0x88] sm:$0xf] }
  0x29   :  { %v2148_v51 = vor.u32 %v2699_v50, %v2147_v49  ;;  %v2696_v53 = vld [vmem:[%s4052_s6 + $0x94] sm:$0xf0]  ;;  %v2131_v55 = vld [vmem:[%s4052_s6 + $0x80] sm:$0xf]  ;;  %v2695_v56 = vld [vmem:[%s4052_s6 + $0x8c] sm:$0xf0] }
  0x2a   :  { %310 = vmatpush.bf16.msra.mxu2 %v1964_v10  ;;  %283 = vmatpush.bf16.msra.mxu0 %v1972_v15  ;;  %v2140_v54 = vor.u32 %v2696_v53, %v2139_v52  ;;  %v2132_v57 = vor.u32 %v2695_v56, %v2131_v55  ;;  %v2123_v58 = vld [vmem:[%s4052_s6 + $0x68] sm:$0xf]  ;;  %v2692_v59 = vld [vmem:[%s4052_s6 + $0x74] sm:$0xf0]  ;;  %v2115_v61 = vld [vmem:[%s4052_s6 + $0x60] sm:$0xf] }
  0x2b   :  { %323 = vmatpush.bf16.msra.mxu3 %v1968_v11  ;;  %296 = vmatpush.bf16.msra.mxu1 %v1976_v17  ;;  %v2124_v60 = vor.u32 %v2692_v59, %v2123_v58  ;;  %v2691_v62 = vld [vmem:[%s4052_s6 + $0x6c] sm:$0xf0]  ;;  %v2107_v0 = vld [vmem:[%s4052_s6 + $0x48] sm:$0xf]  ;;  %v2688_v1 = vld [vmem:[%s4052_s6 + $0x54] sm:$0xf0] }
  0x2c   :  { %v2116_v63 = vor.u32 %v2691_v62, %v2115_v61  ;;  %v2108_v2 = vor.u32 %v2688_v1, %v2107_v0  ;;  %v2099_v3 = vld [vmem:[%s4052_s6 + $0x40] sm:$0xf]  ;;  %v2687_v4 = vld [vmem:[%s4052_s6 + $0x4c] sm:$0xf0]  ;;  %v2091_v6 = vld [vmem:[%s4052_s6 + $0x28] sm:$0xf] }
  0x2d   :  { %v2100_v5 = vor.u32 %v2687_v4, %v2099_v3  ;;  %v2684_v7 = vld [vmem:[%s4052_s6 + $0x34] sm:$0xf0]  ;;  %v108_v8 = vld [vmem:[%s4053_s7] sm:$0xf]  ;;  %v2683_v11 = vld [vmem:[%s4052_s6 + $0x2c] sm:$0xf0] }
  0x2e   :  { %311 = vmatpush.bf16.msra.mxu2 %v1948_v22  ;;  %284 = vmatpush.bf16.msra.mxu0 %v1956_v25  ;;  %v2092_v9 = vor.u32 %v2684_v7, %v2091_v6  ;;  %v2083_v10 = vld [vmem:[%s4052_s6 + $0x20] sm:$0xf]  ;;  %v112_v13 = vperm.slane %v108_v8, 2  ;;  %v2075_v14 = vld [vmem:[%s4052_s6 + $0x8] sm:$0xf]  ;;  %v110_v16 = vperm.slane %v108_v8, 0 }
  0x2f   :  { %324 = vmatpush.bf16.msra.mxu3 %v1952_v24  ;;  %297 = vmatpush.bf16.msra.mxu1 %v1960_v26  ;;  %v2084_v12 = vor.u32 %v2683_v11, %v2083_v10  ;;  %v2680_v15 = vld [vmem:[%s4052_s6 + $0x14] sm:$0xf0]  ;;  %v111_v17 = vperm.slane %v108_v8, 1  ;;  %v2067_v19 = vld [vmem:[%s4052_s6] sm:$0xf]  ;;  %v113_v21 = vperm.slane %v108_v8, 3 }
  0x30   :  { %v2076_v18 = vor.u32 %v2680_v15, %v2075_v14  ;;  %v2679_v20 = vld [vmem:[%s4052_s6 + $0xc] sm:$0xf0]  ;;  %v73_v25 = vld [vmem:[%s4054_s0] sm:$0xff]  ;;  %v2181_v28 = vld [vmem:[%s4052_s6 + $0xf0] sm:$0xf0]  ;;  %s4056_s7 = sld [smem:[#allocation8_spill]] }
  0x31   :  { %312 = vmatmul.bf16.vlgmr.msra.gmra.mxu2 %v3171_v29  ;;  %v2068_v22 = vor.u32 %v2679_v20, %v2067_v19  ;;  %v2705_v27 = vld [vmem:[%s4052_s6 + $0xe4] sm:$0xf]  ;;  %v3291_v31 = vpack.c.bf16 %v73_v25, %v73_v25  ;;  %v2165_v40 = vld [vmem:[%s4052_s6 + $0xd0] sm:$0xf0]  ;;  %v2706_v41 = vld [vmem:[%s4052_s6 + $0xec] sm:$0xf] }
  0x32   :  { %325 = vmatmul.bf16.vlgmr.msra.gmra.mxu3 %v3171_v29  ;;  %285 = vmatpush.bf16.msra.mxu0 %v1940_v32  ;;  %v2184_v37 = vor.u32 %v2705_v27, %v2181_v28  ;;  %v2701_v38 = vld [vmem:[%s4052_s6 + $0xc4] sm:$0xf]  ;;  %v2189_v42 = vld [vmem:[%s4052_s6 + $0xf8] sm:$0xf0]  ;;  %v2702_v52 = vld [vmem:[%s4052_s6 + $0xcc] sm:$0xf] }
  0x33   :  { %298 = vmatpush.bf16.msra.mxu1 %v1944_v33  ;;  %596 = vmatpush.bf16.msrb.mxu2 %v2180_v39  ;;  %v2192_v46 = vor.u32 %v2706_v41, %v2189_v42  ;;  %v2697_v47 = vld [vmem:[%s4052_s6 + $0xa4] sm:$0xf]  ;;  %v2173_v53 = vld [vmem:[%s4052_s6 + $0xd8] sm:$0xf0]  ;;  %v2698_v61 = vld [vmem:[%s4052_s6 + $0xac] sm:$0xf] }
  0x34   :  { %v2176_v58 = vor.u32 %v2702_v52, %v2173_v53  ;;  %v2693_v59 = vld [vmem:[%s4052_s6 + $0x84] sm:$0xf]  ;;  %v2157_v62 = vld [vmem:[%s4052_s6 + $0xb8] sm:$0xf0]  ;;  %v2117_v3 = vld [vmem:[%s4052_s6 + $0x70] sm:$0xf0] }
  0x35   :  { %286 = vmatmul.bf16.vlgmr.msra.gmra.mxu0 %v3171_v29  ;;  %v2160_v1 = vor.u32 %v2698_v61, %v2157_v62  ;;  %v2694_v4 = vld [vmem:[%s4052_s6 + $0x8c] sm:$0xf]  ;;  %v2685_v8 = vld [vmem:[%s4052_s6 + $0x44] sm:$0xf]  ;;  %v2125_v11 = vld [vmem:[%s4052_s6 + $0x78] sm:$0xf0] }
  0x36   :  { %299 = vmatmul.bf16.vlgmr.msra.gmra.mxu1 %v3171_v29  ;;  %622 = vmatpush.bf16.msrb.mxu0 %v2188_v36  ;;  %v2690_v10 = vld [vmem:[%s4052_s6 + $0x6c] sm:$0xf]  ;;  %v2681_v14 = vld [vmem:[%s4052_s6 + $0x24] sm:$0xf]  ;;  %v2085_v15 = vld [vmem:[%s4052_s6 + $0x30] sm:$0xf0] }
  0x37   :  { %597 = vmatpush.bf16.msrb.mxu2 %v2164_v45  ;;  %v2168_v45 = vor.u32 %v2701_v38, %v2165_v40  ;;  %v2677_v20 = vld [vmem:[%s4052_s6 + $0x4] sm:$0xf]  ;;  %v2678_v27 = vld [vmem:[%s4052_s6 + $0xc] sm:$0xf]  ;;  %v2077_v28 = vld [vmem:[%s4052_s6 + $0x18] sm:$0xf0] }
  0x3a   :  { %623 = vmatpush.bf16.msrb.mxu0 %v2172_v44 }
  0x3b   :  { %598 = vmatpush.bf16.msrb.mxu2 %v2148_v51  ;;  %v2149_v51 = vld [vmem:[%s4052_s6 + $0xb0] sm:$0xf0] }
  0x3e   :  { %624 = vmatpush.bf16.msrb.mxu0 %v2156_v48 }
  0x3f   :  { %599 = vmatpush.bf16.msrb.mxu2 %v2132_v57  ;;  %v2152_v57 = vor.u32 %v2697_v47, %v2149_v51 }
  0x42   :  { %625 = vmatpush.bf16.msrb.mxu0 %v2140_v54 }
  0x43   :  { %600 = vmatpush.bf16.msrb.mxu2 %v2116_v63 }
  0x46   :  { %626 = vmatpush.bf16.msrb.mxu0 %v2124_v60  ;;  %v2133_v60 = vld [vmem:[%s4052_s6 + $0x90] sm:$0xf0] }
  0x47   :  { %601 = vmatpush.bf16.msrb.mxu2 %v2100_v5  ;;  %v2136_v0 = vor.u32 %v2693_v59, %v2133_v60  ;;  %v2141_v5 = vld [vmem:[%s4052_s6 + $0x98] sm:$0xf0] }
  0x48   :  { %v2144_v7 = vor.u32 %v2694_v4, %v2141_v5 }
  0x4a   :  { %627 = vmatpush.bf16.msrb.mxu0 %v2108_v2  ;;  %v2689_v2 = vld [vmem:[%s4052_s6 + $0x64] sm:$0xf] }
  0x4b   :  { %602 = vmatpush.bf16.msrb.mxu2 %v2084_v12  ;;  %v2120_v6 = vor.u32 %v2689_v2, %v2117_v3 }
  0x4e   :  { %628 = vmatpush.bf16.msrb.mxu0 %v2092_v9  ;;  %v2101_v9 = vld [vmem:[%s4052_s6 + $0x50] sm:$0xf0] }
  0x4f   :  { %603 = vmatpush.bf16.msrb.mxu2 %v2068_v22  ;;  %v2104_v12 = vor.u32 %v2685_v8, %v2101_v9  ;;  %v2682_v22 = vld [vmem:[%s4052_s6 + $0x2c] sm:$0xf] }
  0x52   :  { %629 = vmatpush.bf16.msrb.mxu0 %v2076_v18  ;;  %604 = vmatmul.bf16.vlgmr.msrb.gmra.mxu2 %v3291_v31  ;;  %v2088_v18 = vor.u32 %v2681_v14, %v2085_v15 }
  0x55   :  { %630 = vmatmul.bf16.vlgmr.msrb.gmra.mxu0 %v3291_v31 }
  0xb2   :  { %v287_v24 = vpop.f32.mrf.mxu0 }
  0xb3   :  { %v300_v30 = vpop.f32.mrf.mxu1  ;;  %v288_v34 = vadd.f32 %v287_v24, %v110_v16  ;;  %v2686_v16 = vld [vmem:[%s4052_s6 + $0x4c] sm:$0xf]  ;;  %v2093_v24 = vld [vmem:[%s4052_s6 + $0x38] sm:$0xf0] }
  0xb4   :  { %v313_v26 = vpop.f32.mrf.mxu2  ;;  %v301_v35 = vadd.f32 %v300_v30, %v111_v17  ;;  %v2109_v17 = vld [vmem:[%s4052_s6 + $0x58] sm:$0xf0]  ;;  %v2080_v30 = vor.u32 %v2678_v27, %v2077_v28 }
  0xb5   :  { %v314_v32 = vadd.f32 %v313_v26, %v112_v13  ;;  %v326_v33 = vpop.f32.mrf.mxu3  ;;  %v2128_v13 = vor.u32 %v2690_v10, %v2125_v11  ;;  %v2112_v19 = vor.u32 %v2686_v16, %v2109_v17  ;;  %v2096_v26 = vor.u32 %v2682_v22, %v2093_v24  ;;  %v2716_v28 = vld [vmem:[%s4056_s7 + $0x38] sm:$0xff] }
  0xb6   :  { %v327_v36 = vadd.f32 %v326_v33, %v113_v21  ;;  %v330_v43 = vpack.c.bf16 %v301_v35, %v288_v34  ;;  %v2069_v21 = vld [vmem:[%s4052_s6 + $0x10] sm:$0xf0]  ;;  %v717_v17 = vsel %vm715_vm1, %v3171_v29, 0 }
  0xb7   :  { %v2072_v25 = vor.u32 %v2677_v20, %v2069_v21  ;;  %726 = vmatpush.bf16.msra.mxu0 %v717_v17  ;;  %v2715_v29 = vld [vmem:[%s4056_s7 + $0x30] sm:$0xff] }
  0xb8   :  { %v331_v39 = vpack.c.bf16 %v327_v36, %v314_v32  ;;  %v360_v56 = vunpack.c.h.b16 %v330_v43 }
  0xba   :  { %339 = vmatpush.bf16.xpose.msrb.mxu3 %v331_v39  ;;  %v364_v44 = vunpack.c.h.b16 %v331_v39  ;;  %v289_v48 = vpop.f32.mrf.mxu0  ;;  %v361_v63 = vpack.c.b16 %v360_v56, %v360_v56 }
  0xbb   :  { %v302_v54 = vpop.f32.mrf.mxu1 }
  0xbc   :  { %v315_v49 = vpop.f32.mrf.mxu2  ;;  %v365_v50 = vpack.c.b16 %v364_v44, %v364_v44  ;;  %v426_v44 = vld [vmem:[%s4055_s1] sm:$0xf] }
  0xbd   :  { %v328_v55 = vpop.f32.mrf.mxu3  ;;  %v431_v47 = vperm.slane %v426_v44, 3  ;;  %v429_v49 = vperm.slane %v426_v44, 1 }
  0xbe   :  { %374 = vmatpush.bf16.xpose.msrb.mxu1 %v365_v50 }
  0xc1   :  { %340 = vmatmul.bf16.vlgmr.msrb.gmra.mxu3 %v330_v43 }
  0xc2   :  { %609 = vmatpush.bf16.msra.mxu3 %v2184_v37 }
  0xc5   :  { %375 = vmatmul.bf16.vlgmr.msrb.gmra.mxu1 %v361_v63 }
  0xc6   :  { %610 = vmatpush.bf16.msra.mxu3 %v2168_v45  ;;  %635 = vmatpush.bf16.msra.mxu1 %v2192_v46  ;;  %v430_v45 = vperm.slane %v426_v44, 2  ;;  %v428_v46 = vperm.slane %v426_v44, 0 }
  0xca   :  { %611 = vmatpush.bf16.msra.mxu3 %v2152_v57  ;;  %636 = vmatpush.bf16.msra.mxu1 %v2176_v58 }
  0xce   :  { %612 = vmatpush.bf16.msra.mxu3 %v2136_v0  ;;  %637 = vmatpush.bf16.msra.mxu1 %v2160_v1 }
  0xd2   :  { %613 = vmatpush.bf16.msra.mxu3 %v2120_v6  ;;  %638 = vmatpush.bf16.msra.mxu1 %v2144_v7  ;;  %v631_v32 = vpop.f32.mrf.mxu0 }
  0xd3   :  { %v632_v48 = vadd.f32 %v631_v32, %v430_v45  ;;  %v2713_v32 = vld [vmem:[%s4056_s7 + $0x20] sm:$0xff] }
  0xd5   :  { %v605_v33 = vpop.f32.mrf.mxu2 }
  0xd6   :  { %614 = vmatpush.bf16.msra.mxu3 %v2104_v12  ;;  %639 = vmatpush.bf16.msra.mxu1 %v2128_v13  ;;  %v606_v51 = vadd.f32 %v605_v33, %v428_v46  ;;  %v2709_v46 = vld [vmem:[%s4056_s7] sm:$0xff] }
  0xda   :  { %615 = vmatpush.bf16.msra.mxu3 %v2088_v18  ;;  %640 = vmatpush.bf16.msra.mxu1 %v2112_v19  ;;  %v633_v34 = vpop.f32.mrf.mxu0 }
  0xdd   :  { %v607_v36 = vpop.f32.mrf.mxu2 }
  0xde   :  { %616 = vmatpush.bf16.msra.mxu3 %v2072_v25  ;;  %641 = vmatpush.bf16.msra.mxu1 %v2096_v26  ;;  %v2712_v36 = vld [vmem:[%s4056_s7 + $0x18] sm:$0xff] }
  0xe1   :  { %617 = vmatmul.bf16.vlgmr.msra.gmra.mxu3 %v3291_v31 }
  0xe2   :  { %642 = vmatpush.bf16.msra.mxu1 %v2080_v30  ;;  %v2714_v30 = vld [vmem:[%s4056_s7 + $0x28] sm:$0xff] }
  0xe5   :  { %643 = vmatmul.bf16.vlgmr.msra.gmra.mxu1 %v3291_v31 }
  0xe6   :  { %801 = vmatpush.bf16.msrb.mxu1 %v2716_v28  ;;  %v2311_v28 = vld [vmem:[%s4023_s10 + $0x70] sm:$0xf0] }
  0xea   :  { %802 = vmatpush.bf16.msrb.mxu1 %v2715_v29  ;;  %v2317_v29 = vld [vmem:[%s4023_s10 + $0x68] sm:$0xf] }
  0xee   :  { %803 = vmatpush.bf16.msrb.mxu1 %v2714_v30  ;;  %v2740_v30 = vld [vmem:[%s4023_s10 + $0x74] sm:$0xf0] }
  0xf2   :  { %804 = vmatpush.bf16.msrb.mxu1 %v2713_v32 }
  0xf6   :  { %805 = vmatpush.bf16.msrb.mxu1 %v2712_v36  ;;  %v2293_v36 = vld [vmem:[%s4023_s10 + $0x40] sm:$0xf] }
 0x142   :  { %v376_v35 = vpop.f32.mrf.mxu1 }
 0x143   :  { %v380_v40 = vmul.f32 0.35355338, %v376_v35 }
 0x144   :  { %v341_v37 = vpop.f32.mrf.mxu3 }
 0x145   :  { %v345_v38 = vmul.f32 0.35355338, %v341_v37  ;;  %v381_v43 = vsel %vm346_vm0, %v380_v40, -inf  ;;  %v2711_v37 = vld [vmem:[%s4056_s7 + $0x10] sm:$0xff] }
 0x146   :  { %806 = vmatpush.bf16.msrb.mxu1 %v2711_v37  ;;  %v2735_v37 = vld [vmem:[%s4023_s10 + $0x4c] sm:$0xf0] }
 0x147   :  { %v347_v39 = vsel %vm346_vm0, %v345_v38, -inf }
 0x148   :  { %348 = vmax.xlane.f32.xlu0 %v347_v39 }
 0x14a   :  { %v378_v41 = vpop.f32.mrf.mxu1 }
 0x14c   :  { %v343_v42 = vpop.f32.mrf.mxu3 }
 0x14d   :  { %v2710_v42 = vld [vmem:[%s4056_s7 + $0x8] sm:$0xff] }
 0x14e   :  { %807 = vmatpush.bf16.msrb.mxu1 %v2710_v42  ;;  %v2736_v42 = vld [vmem:[%s4023_s10 + $0x54] sm:$0xf0] }
 0x150   :  { %382 = vmax.xlane.f32.xlu0 %v381_v43 }
 0x152   :  { %808 = vmatpush.bf16.msrb.mxu1 %v2709_v46 }
 0x162   :  { %v644_v50 = vpop.f32.mrf.mxu1 }
 0x163   :  { %v645_v52 = vadd.f32 %v644_v50, %v431_v47 }
 0x164   :  { %v618_v53 = vpop.f32.mrf.mxu3 }
 0x165   :  { %v649_v54 = vpack.c.bf16 %v645_v52, %v632_v48  ;;  %v619_v55 = vadd.f32 %v618_v53, %v429_v49  ;;  %v2755_v52 = vld [vmem:[%s4023_s10 + $0xec] sm:$0xf0]  ;;  %v2753_v53 = vld [vmem:[%s4023_s10 + $0xe4] sm:$0xf] }
 0x167   :  { %v681_v56 = vunpack.c.h.b16 %v649_v54  ;;  %v648_v57 = vpack.c.bf16 %v619_v55, %v606_v51  ;;  %657 = vmatpush.bf16.xpose.msra.mxu2 %v649_v54  ;;  %v2373_v51 = vld [vmem:[%s4023_s10 + $0xe0] sm:$0xf]  ;;  %v2375_v55 = vld [vmem:[%s4023_s10 + $0xf0] sm:$0xf0] }
 0x168   :  { %v2374_v54 = vor.u32 %v2755_v52, %v2373_v51 }
 0x169   :  { %v682_v58 = vpack.c.b16 %v681_v56, %v681_v56  ;;  %v677_v59 = vunpack.c.h.b16 %v648_v57  ;;  %v2381_v56 = vld [vmem:[%s4023_s10 + $0xe8] sm:$0xf] }
 0x16a   :  { %v646_v60 = vpop.f32.mrf.mxu1  ;;  %1121 = vmatpush.bf16.msrb.mxu0 %v2374_v54  ;;  %v2277_v54 = vld [vmem:[%s4023_s10 + $0x20] sm:$0xf] }
 0x16b   :  { %691 = vmatpush.bf16.xpose.msrb.mxu3 %v682_v58  ;;  %v678_v62 = vpack.c.b16 %v677_v59, %v677_v59  ;;  %v2378_v58 = vor.u32 %v2753_v53, %v2375_v55  ;;  %v2357_v60 = vld [vmem:[%s4023_s10 + $0xc0] sm:$0xf]  ;;  %v2731_v55 = vld [vmem:[%s4023_s10 + $0x2c] sm:$0xf0] }
 0x16c   :  { %v620_v61 = vpop.f32.mrf.mxu3 }
 0x16d   :  { %v2751_v61 = vld [vmem:[%s4023_s10 + $0xcc] sm:$0xf0] }
 0x16e   :  { %658 = vmatmul.bf16.vlgmr.msra.gmra.mxu2 %v648_v57  ;;  %v2756_v57 = vld [vmem:[%s4023_s10 + $0xf4] sm:$0xf0] }
 0x16f   :  { %827 = vmatpush.bf16.msrb.mxu2 %v717_v17  ;;  %v2382_v59 = vor.u32 %v2756_v57, %v2381_v56  ;;  %v2327_v17 = vld [vmem:[%s4023_s10 + $0x90] sm:$0xf0]  ;;  %v2285_v57 = vld [vmem:[%s4023_s10 + $0x28] sm:$0xf] }
 0x170   :  { %v2279_v56 = vld [vmem:[%s4023_s10 + $0x30] sm:$0xf0] }
 0x171   :  { %1147 = vmatpush.bf16.msra.mxu1 %v2382_v59 }
 0x172   :  { %692 = vmatmul.bf16.vlgmr.msrb.gmra.mxu3 %v678_v62  ;;  %v2749_v62 = vld [vmem:[%s4023_s10 + $0xc4] sm:$0xf] }
 0x173   :  { %1134 = vmatpush.bf16.msra.mxu2 %v2378_v58  ;;  %v2732_v58 = vld [vmem:[%s4023_s10 + $0x34] sm:$0xf0] }
 0x1bb   :  { %v349_v63 = vpop.xlane.xlu0 %348 }
 0x1bc   :  { %v350_v0 = vsub.f32 %v345_v38, %v349_v63  ;;  %v2358_v63 = vor.u32 %v2751_v61, %v2357_v60  ;;  %v2286_v60 = vor.u32 %v2732_v58, %v2285_v57  ;;  %v2724_v61 = vld [vmem:[%s4024_s8 + $0x38] sm:$0xff]  ;;  %v2786_v57 = vld [vmem:[%s4026_s14 + $0xec] sm:$0xf] }
 0x1bd   :  { %902 = vmatpush.bf16.msra.mxu3 %v2724_v61 }
 0x1be   :  { %v351_v1 = vmul.f32 1.442695, %v350_v0  ;;  %v2359_v0 = vld [vmem:[%s4023_s10 + $0xd0] sm:$0xf0]  ;;  %1122 = vmatpush.bf16.msrb.mxu0 %v2358_v63  ;;  %v2727_v63 = vld [vmem:[%s4023_s10 + $0xc] sm:$0xf0] }
 0x1c0   :  { %2826 = vpow2.f32 %v351_v1  ;;  %v2365_v1 = vld [vmem:[%s4023_s10 + $0xc8] sm:$0xf] }
 0x1c3   :  { %v383_v2 = vpop.xlane.xlu0 %382 }
 0x1c4   :  { %v384_v3 = vsub.f32 %v380_v40, %v383_v2  ;;  %v2752_v2 = vld [vmem:[%s4023_s10 + $0xd4] sm:$0xf0] }
 0x1c6   :  { %v2827_v4 = vpop.eup %2826  ;;  %v385_v5 = vmul.f32 1.442695, %v384_v3  ;;  %v2362_v3 = vor.u32 %v2749_v62, %v2359_v0  ;;  %v2261_v62 = vld [vmem:[%s4023_s10] sm:$0xf]  ;;  %v2725_v0 = vld [vmem:[%s4023_s10 + $0x4] sm:$0xf] }
 0x1c7   :  { %v353_v6 = vsel %vm346_vm0, %v2827_v4, 0.0 }
 0x1c8   :  { %2828 = vpow2.f32 %v385_v5  ;;  %354 = vadd.xlane.f32.xlu1 %v353_v6  ;;  %v2341_v5 = vld [vmem:[%s4023_s10 + $0xa0] sm:$0xf]  ;;  %v2747_v6 = vld [vmem:[%s4023_s10 + $0xac] sm:$0xf0]  ;;  %1135 = vmatpush.bf16.msra.mxu2 %v2362_v3  ;;  %v2269_v3 = vld [vmem:[%s4023_s10 + $0x8] sm:$0xf] }
 0x1ce   :  { %v2829_v7 = vpop.eup %2828 }
 0x1cf   :  { %v387_v8 = vsel %vm346_vm0, %v2829_v7, 0.0 }
 0x1d0   :  { %388 = vadd.xlane.f32.xlu1 %v387_v8  ;;  %v2343_v8 = vld [vmem:[%s4023_s10 + $0xb0] sm:$0xf0] }
 0x1f1   :  { %v659_v9 = vpop.f32.mrf.mxu2 }
 0x1f2   :  { %v663_v10 = vmul.f32 0.35355338, %v659_v9  ;;  %v2349_v9 = vld [vmem:[%s4023_s10 + $0xa8] sm:$0xf] }
 0x1f4   :  { %v664_v11 = vsel %vm346_vm0, %v663_v10, -inf }
 0x1f5   :  { %v693_v12 = vpop.f32.mrf.mxu3  ;;  %665 = vmax.xlane.f32.xlu2 %v664_v11  ;;  %v2342_v11 = vor.u32 %v2747_v6, %v2341_v5 }
 0x1f6   :  { %v697_v13 = vmul.f32 0.35355338, %v693_v12 }
 0x1f7   :  { %1123 = vmatpush.bf16.msrb.mxu0 %v2342_v11  ;;  %v2719_v11 = vld [vmem:[%s4024_s8 + $0x10] sm:$0xff] }
 0x1f8   :  { %v698_v15 = vsel %vm346_vm0, %v697_v13, -inf }
 0x1f9   :  { %v661_v14 = vpop.f32.mrf.mxu2 }
 0x1fa   :  { %v2325_v14 = vld [vmem:[%s4023_s10 + $0x80] sm:$0xf] }
 0x1fd   :  { %v695_v16 = vpop.f32.mrf.mxu3  ;;  %699 = vmax.xlane.f32.xlu2 %v698_v15  ;;  %v2743_v15 = vld [vmem:[%s4023_s10 + $0x8c] sm:$0xf0] }
 0x1fe   :  { %v2741_v16 = vld [vmem:[%s4023_s10 + $0x84] sm:$0xf] }
 0x23b   :  { %v355_v18 = vpop.xlane.xlu1 %354 }
 0x23c   :  { %2830 = vrcp.f32 %v355_v18  ;;  %v2333_v18 = vld [vmem:[%s4023_s10 + $0x88] sm:$0xf] }
 0x242   :  { %v2831_v20 = vpop.eup %2830 }
 0x243   :  { %v389_v19 = vpop.xlane.xlu1 %388  ;;  %v357_v22 = vmul.f32 %v2831_v20, %v2827_v4  ;;  %v2366_v4 = vor.u32 %v2752_v2, %v2365_v1  ;;  %v2326_v20 = vor.u32 %v2743_v15, %v2325_v14  ;;  %v2262_v1 = vor.u32 %v2727_v63, %v2261_v62  ;;  %v2263_v2 = vld [vmem:[%s4023_s10 + $0x10] sm:$0xf0]  ;;  %v2383_v14 = vld [vmem:[%s4023_s10 + $0xf8] sm:$0xf0]  ;;  %v2717_v15 = vld [vmem:[%s4024_s8] sm:$0xff] }
 0x244   :  { %2832 = vrcp.f32 %v389_v19  ;;  %v2744_v19 = vld [vmem:[%s4023_s10 + $0x94] sm:$0xf0]  ;;  %v2266_v5 = vor.u32 %v2725_v0, %v2263_v2  ;;  %v2778_v62 = vld [vmem:[%s4026_s14 + $0xac] sm:$0xf]  ;;  %v2479_v63 = vld [vmem:[%s4026_s14 + $0xb8] sm:$0xf0] }
 0x245   :  { %1148 = vmatpush.bf16.msra.mxu1 %v2366_v4  ;;  %1124 = vmatpush.bf16.msrb.mxu0 %v2326_v20  ;;  %v2728_v4 = vld [vmem:[%s4023_s10 + $0x14] sm:$0xf0]  ;;  %v2482_v0 = vor.u32 %v2778_v62, %v2479_v63  ;;  %v2463_v2 = vld [vmem:[%s4026_s14 + $0x98] sm:$0xf0]  ;;  %v2493_v62 = vld [vmem:[%s4026_s14 + $0xc8] sm:$0xf] }
 0x246   :  { %v2270_v6 = vor.u32 %v2728_v4, %v2269_v3  ;;  %v2785_v4 = vld [vmem:[%s4026_s14 + $0xe4] sm:$0xf] }
 0x24a   :  { %v2833_v21 = vpop.eup %2832 }
 0x24b   :  { %v391_v24 = vmul.f32 %v2833_v21, %v2829_v7  ;;  %v2745_v7 = vld [vmem:[%s4023_s10 + $0xa4] sm:$0xf] }
 0x24c   :  { %v2346_v12 = vor.u32 %v2745_v7, %v2343_v8  ;;  %v2723_v7 = vld [vmem:[%s4024_s8 + $0x30] sm:$0xff]  ;;  %v2722_v8 = vld [vmem:[%s4024_s8 + $0x28] sm:$0xff] }
 0x24d   :  { %v392_v25 = vadd.f32 %v391_v24, %v357_v22  ;;  %v2330_v22 = vor.u32 %v2741_v16, %v2327_v17  ;;  %v2334_v24 = vor.u32 %v2744_v19, %v2333_v18  ;;  %903 = vmatpush.bf16.msra.mxu3 %v2723_v7  ;;  %v2821_v16 = vld [vmem:[%s4057_s30] ss:$0 sm:$0xff]  ;;  %v2750_v18 = vld [vmem:[%s4023_s10 + $0xcc] sm:$0xf]  ;;  %v2367_v19 = vld [vmem:[%s4023_s10 + $0xd8] sm:$0xf0] }
 0x24e   :  { %1136 = vmatpush.bf16.msra.mxu2 %v2346_v12  ;;  %v2718_v12 = vld [vmem:[%s4024_s8 + $0x8] sm:$0xff] }
 0x24f   :  { %v393_v26 = vmul.f32 0.5, %v392_v25  ;;  %v2309_v25 = vld [vmem:[%s4023_s10 + $0x60] sm:$0xf] }
 0x251   :  { %v711_v27 = vpack.c.bf16 %v393_v26, %v393_v26  ;;  %v2739_v26 = vld [vmem:[%s4023_s10 + $0x6c] sm:$0xf0]  ;;  %904 = vmatpush.bf16.msra.mxu3 %v2722_v8  ;;  %v2770_v8 = vld [vmem:[%s4026_s14 + $0x6c] sm:$0xf] }
 0x252   :  { %v2310_v32 = vor.u32 %v2739_v26, %v2309_v25  ;;  %1137 = vmatpush.bf16.msra.mxu2 %v2330_v22  ;;  %v2370_v22 = vor.u32 %v2750_v18, %v2367_v19  ;;  %v2746_v25 = vld [vmem:[%s4023_s10 + $0xac] sm:$0xf]  ;;  %v2351_v26 = vld [vmem:[%s4023_s10 + $0xb8] sm:$0xf0]  ;;  %v2471_v18 = vld [vmem:[%s4026_s14 + $0xb0] sm:$0xf0] }
 0x253   :  { %2193 = vmatmul.msk.bf16.vlgmr.msra.gmra.mxu0 %vm346_vm0, %v711_v27  ;;  %v2737_v27 = vld [vmem:[%s4023_s10 + $0x64] sm:$0xf] }
 0x254   :  { %1125 = vmatpush.bf16.msrb.mxu0 %v2310_v32  ;;  %v2742_v32 = vld [vmem:[%s4023_s10 + $0x8c] sm:$0xf] }
 0x268   :  { %v666_v33 = vpop.xlane.xlu2 %665 }
 0x269   :  { %v667_v34 = vsub.f32 %v663_v10, %v666_v33  ;;  %v2748_v10 = vld [vmem:[%s4023_s10 + $0xb4] sm:$0xf0] }
 0x26b   :  { %v668_v35 = vmul.f32 1.442695, %v667_v34  ;;  %v2314_v34 = vor.u32 %v2737_v27, %v2311_v28  ;;  %v2354_v28 = vor.u32 %v2746_v25, %v2351_v26  ;;  %v2773_v25 = vld [vmem:[%s4026_s14 + $0x84] sm:$0xf]  ;;  %v951_v26 = vld [vmem:[%s4027_s11] sm:$0xf] }
 0x26d   :  { %2834 = vpow2.f32 %v668_v35  ;;  %v2318_v35 = vor.u32 %v2740_v30, %v2317_v29  ;;  %1138 = vmatpush.bf16.msra.mxu2 %v2314_v34 }
 0x270   :  { %v700_v38 = vpop.xlane.xlu2 %699 }
 0x271   :  { %v701_v39 = vsub.f32 %v697_v13, %v700_v38  ;;  %v2350_v13 = vor.u32 %v2748_v10, %v2349_v9  ;;  %v2733_v38 = vld [vmem:[%s4023_s10 + $0x44] sm:$0xf]  ;;  %v2720_v10 = vld [vmem:[%s4024_s8 + $0x18] sm:$0xff] }
 0x272   :  { %v2721_v9 = vld [vmem:[%s4024_s8 + $0x20] sm:$0xff] }
 0x273   :  { %v3417_v40 = vpop.eup %2834  ;;  %v702_v41 = vmul.f32 1.442695, %v701_v39  ;;  %1149 = vmatpush.bf16.msra.mxu1 %v2350_v13  ;;  %v2295_v39 = vld [vmem:[%s4023_s10 + $0x50] sm:$0xf0]  ;;  %905 = vmatpush.bf16.msra.mxu3 %v2721_v9  ;;  %v2754_v13 = vld [vmem:[%s4023_s10 + $0xec] sm:$0xf] }
 0x274   :  { %v670_v43 = vsel %vm346_vm0, %v3417_v40, 0.0  ;;  %v2386_v17 = vor.u32 %v2754_v13, %v2383_v14  ;;  %v2447_v9 = vld [vmem:[%s4026_s14 + $0x78] sm:$0xf0]  ;;  %v2766_v13 = vld [vmem:[%s4026_s14 + $0x4c] sm:$0xf] }
 0x275   :  { %2836 = vpow2.f32 %v702_v41  ;;  %671 = vadd.xlane.f32.xlu0 %v670_v43  ;;  %v2301_v41 = vld [vmem:[%s4023_s10 + $0x48] sm:$0xf]  ;;  %v2294_v43 = vor.u32 %v2735_v37, %v2293_v36  ;;  %v2319_v36 = vld [vmem:[%s4023_s10 + $0x78] sm:$0xf0] }
 0x276   :  { %v2302_v46 = vor.u32 %v2736_v42, %v2301_v41  ;;  %v2730_v42 = vld [vmem:[%s4023_s10 + $0x2c] sm:$0xf]  ;;  %v2431_v14 = vld [vmem:[%s4026_s14 + $0x58] sm:$0xf0] }
 0x277   :  { %1150 = vmatpush.bf16.msra.mxu1 %v2334_v24  ;;  %1126 = vmatpush.bf16.msrb.mxu0 %v2294_v43  ;;  %v2287_v43 = vld [vmem:[%s4023_s10 + $0x38] sm:$0xf0] }
 0x278   :  { %906 = vmatpush.bf16.msra.mxu3 %v2720_v10  ;;  %v2450_v10 = vor.u32 %v2770_v8, %v2447_v9 }
 0x27b   :  { %v3424_v44 = vpop.eup %2836  ;;  %1151 = vmatpush.bf16.msra.mxu1 %v2318_v35  ;;  %v2738_v35 = vld [vmem:[%s4023_s10 + $0x6c] sm:$0xf] }
 0x27c   :  { %v704_v45 = vsel %vm346_vm0, %v3424_v44, 0.0  ;;  %907 = vmatpush.bf16.msra.mxu3 %v2719_v11  ;;  %v2322_v37 = vor.u32 %v2738_v35, %v2319_v36  ;;  %v2781_v11 = vld [vmem:[%s4026_s14 + $0xc4] sm:$0xf]  ;;  %v956_v35 = vperm.slane %v951_v26, 3 }
 0x27d   :  { %705 = vadd.xlane.f32.xlu1 %v704_v45  ;;  %v2298_v45 = vor.u32 %v2733_v38, %v2295_v39  ;;  %v2734_v38 = vld [vmem:[%s4023_s10 + $0x4c] sm:$0xf]  ;;  %v2303_v39 = vld [vmem:[%s4023_s10 + $0x58] sm:$0xf0] }
 0x27e   :  { %v2306_v41 = vor.u32 %v2734_v38, %v2303_v39  ;;  %v954_v38 = vperm.slane %v951_v26, 1  ;;  %v2439_v39 = vld [vmem:[%s4026_s14 + $0x70] sm:$0xf0] }
 0x27f   :  { %1139 = vmatpush.bf16.msra.mxu2 %v2298_v45  ;;  %1152 = vmatpush.bf16.msra.mxu1 %v2302_v46  ;;  %v2290_v45 = vor.u32 %v2730_v42, %v2287_v43  ;;  %v2726_v46 = vld [vmem:[%s4023_s10 + $0xc] sm:$0xf]  ;;  %v2787_v42 = vld [vmem:[%s4026_s14 + $0xec] sm:$0xf0] }
 0x280   :  { %908 = vmatpush.bf16.msra.mxu3 %v2718_v12  ;;  %v2487_v12 = vld [vmem:[%s4026_s14 + $0xd0] sm:$0xf0] }
 0x283   :  { %1153 = vmatpush.bf16.msra.mxu1 %v2286_v60  ;;  %v2495_v60 = vld [vmem:[%s4026_s14 + $0xd8] sm:$0xf0] }
 0x284   :  { %909 = vmatpush.bf16.msra.mxu3 %v2717_v15  ;;  %v2490_v15 = vor.u32 %v2781_v11, %v2487_v12  ;;  %v2391_v12 = vld [vmem:[%s4026_s14 + $0x10] sm:$0xf0] }
 0x287   :  { %1154 = vmatpush.bf16.msra.mxu1 %v2270_v6 }
 0x288   :  { %1160 = vmatpush.bf16.msrb.mxu3 %v2386_v17  ;;  %v2777_v17 = vld [vmem:[%s4026_s14 + $0xa4] sm:$0xf] }
 0x28c   :  { %1161 = vmatpush.bf16.msrb.mxu3 %v2370_v22  ;;  %v2474_v22 = vor.u32 %v2777_v17, %v2471_v18 }
 0x290   :  { %1162 = vmatpush.bf16.msrb.mxu3 %v2354_v28  ;;  %v2455_v28 = vld [vmem:[%s4026_s14 + $0x90] sm:$0xf0] }
 0x2d0   :  { %v728_v47 = vpop.f32.mrf.mxu0 }
 0x2d1   :  { %v729_v48 = vadd.f32 %v728_v47, %v3161_v23 }
 0x2d3   :  { %v732_v49 = vpack.c.bf16 %v729_v48, %v729_v48 }
 0x2d5   :  { %809 = vmatmul.bf16.vlgmr.msrb.gmra.mxu1 %v732_v49 }
 0x2d8   :  { %v730_v50 = vpop.f32.mrf.mxu0 }
 0x2e8   :  { %v672_v21 = vpop.xlane.xlu0 %671 }
 0x2e9   :  { %2838 = vrcp.f32 %v672_v21 }
 0x2ef   :  { %v2839_v47 = vpop.eup %2838 }
 0x2f0   :  { %v706_v33 = vpop.xlane.xlu1 %705  ;;  %v674_v49 = vmul.f32 %v2839_v47, %v3417_v40  ;;  %v2729_v40 = vld [vmem:[%s4023_s10 + $0x24] sm:$0xf]  ;;  %v2271_v47 = vld [vmem:[%s4023_s10 + $0x18] sm:$0xf0] }
 0x2f1   :  { %2840 = vrcp.f32 %v706_v33  ;;  %v2282_v59 = vor.u32 %v2729_v40, %v2279_v56  ;;  %v2335_v33 = vld [vmem:[%s4023_s10 + $0x98] sm:$0xf0] }
 0x2f2   :  { %v2338_v34 = vor.u32 %v2742_v32, %v2335_v33  ;;  %v2758_v32 = vld [vmem:[%s4026_s14 + $0xc] sm:$0xf]  ;;  %v2399_v33 = vld [vmem:[%s4026_s14 + $0x18] sm:$0xf0] }
 0x2f3   :  { %1140 = vmatpush.bf16.msra.mxu2 %v2282_v59  ;;  %v2782_v59 = vld [vmem:[%s4026_s14 + $0xcc] sm:$0xf]  ;;  %v2402_v36 = vor.u32 %v2758_v32, %v2399_v33  ;;  %v2421_v32 = vld [vmem:[%s4026_s14 + $0x40] sm:$0xf]  ;;  %v2767_v33 = vld [vmem:[%s4026_s14 + $0x4c] sm:$0xf0] }
 0x2f4   :  { %1163 = vmatpush.bf16.msrb.mxu3 %v2338_v34  ;;  %v2498_v61 = vor.u32 %v2782_v59, %v2495_v60  ;;  %v955_v34 = vperm.slane %v951_v26, 2  ;;  %v2761_v59 = vld [vmem:[%s4026_s14 + $0x24] sm:$0xf] }
 0x2f7   :  { %v2841_v48 = vpop.eup %2840  ;;  %1141 = vmatpush.bf16.msra.mxu2 %v2266_v5  ;;  %v2503_v5 = vld [vmem:[%s4026_s14 + $0xf0] sm:$0xf0] }
 0x2f8   :  { %v708_v50 = vmul.f32 %v2841_v48, %v3424_v44  ;;  %v2278_v44 = vor.u32 %v2731_v55, %v2277_v54  ;;  %1164 = vmatpush.bf16.msrb.mxu3 %v2322_v37  ;;  %v2274_v48 = vor.u32 %v2726_v46, %v2271_v47  ;;  %v2506_v6 = vor.u32 %v2785_v4, %v2503_v5  ;;  %v2769_v37 = vld [vmem:[%s4026_s14 + $0x64] sm:$0xf] }
 0x2f9   :  { %v2442_v43 = vor.u32 %v2769_v37, %v2439_v39  ;;  %v2768_v37 = vld [vmem:[%s4026_s14 + $0x54] sm:$0xf0]  ;;  %v2763_v39 = vld [vmem:[%s4026_s14 + $0x2c] sm:$0xf0] }
 0x2fa   :  { %v709_v51 = vadd.f32 %v708_v50, %v674_v49  ;;  %1127 = vmatpush.bf16.msrb.mxu0 %v2278_v44  ;;  %1451 = vmatpush.bf16.msrb.mxu1 %v2506_v6  ;;  %v2757_v6 = vld [vmem:[%s4026_s14 + $0x4] sm:$0xf] }
 0x2fc   :  { %v710_v52 = vmul.f32 0.5, %v709_v51  ;;  %1165 = vmatpush.bf16.msrb.mxu3 %v2306_v41  ;;  %v2501_v41 = vld [vmem:[%s4026_s14 + $0xe0] sm:$0xf] }
 0x2fe   :  { %v816_v53 = vpack.c.bf16 %v710_v52, %v710_v52  ;;  %1128 = vmatpush.bf16.msrb.mxu0 %v2262_v1  ;;  %v2774_v1 = vld [vmem:[%s4026_s14 + $0x8c] sm:$0xf]  ;;  %1452 = vmatpush.bf16.msrb.mxu1 %v2490_v15  ;;  %v2775_v15 = vld [vmem:[%s4026_s14 + $0x8c] sm:$0xf0] }
 0x2ff   :  { %v2466_v3 = vor.u32 %v2774_v1, %v2463_v2  ;;  %v2784_v1 = vld [vmem:[%s4026_s14 + $0xd4] sm:$0xf0]  ;;  %v2469_v2 = vld [vmem:[%s4026_s14 + $0xa0] sm:$0xf] }
 0x300   :  { %2226 = vmatmul.msk.bf16.vlgmr.msrb.gmra.mxu2 %vm346_vm0, %v816_v53  ;;  %1166 = vmatpush.bf16.msrb.mxu3 %v2290_v45  ;;  %v953_v45 = vperm.slane %v951_v26, 0  ;;  %v2494_v9 = vor.u32 %v2784_v1, %v2493_v62  ;;  %v2445_v26 = vld [vmem:[%s4026_s14 + $0x68] sm:$0xf] }
 0x302   :  { %1453 = vmatpush.bf16.msrb.mxu1 %v2474_v22  ;;  %v2437_v22 = vld [vmem:[%s4026_s14 + $0x60] sm:$0xf] }
 0x304   :  { %1167 = vmatpush.bf16.msrb.mxu3 %v2274_v48 }
 0x352   :  { %v810_v20 = vpop.f32.mrf.mxu1 }
 0x353   :  { %v811_v21 = vadd.f32 %v2821_v16, %v810_v20  ;;  %v2434_v16 = vor.u32 %v2766_v13, %v2431_v14  ;;  %v2762_v20 = vld [vmem:[%s4026_s14 + $0x2c] sm:$0xf]  ;;  %v2780_v13 = vld [vmem:[%s4026_s14 + $0xb4] sm:$0xf0]  ;;  %v2453_v14 = vld [vmem:[%s4026_s14 + $0x80] sm:$0xf] }
 0x355   :  { %v814_v24 = vmul.f32 0.5, %v811_v21  ;;  %v2415_v21 = vld [vmem:[%s4026_s14 + $0x38] sm:$0xf0] }
 0x357   :  { %v3624_v27 = vmax.f32 %v814_v24, 0.0  ;;  %v2418_v24 = vor.u32 %v2762_v20, %v2415_v21  ;;  %v2454_v20 = vor.u32 %v2775_v15, %v2453_v14  ;;  %v2776_v21 = vld [vmem:[%s4026_s14 + $0x94] sm:$0xf0] }
 0x359   :  { %v3628_v29 = vpack.c.bf16 %v3624_v27, %v3624_v27 }
 0x35a   :  { %v812_v30 = vpop.f32.mrf.mxu1 }
 0x35b   :  { %1129 = vmatmul.bf16.vlgmr.msrb.gmra.mxu0 %v3628_v29  ;;  %1142 = vmatmul.bf16.vlgmr.msra.gmra.mxu2 %v3628_v29  ;;  %v2458_v30 = vor.u32 %v2773_v25, %v2455_v28 }
 0x35c   :  { %1155 = vmatmul.bf16.vlgmr.msra.gmra.mxu1 %v3628_v29 }
 0x35d   :  { %1454 = vmatpush.bf16.msrb.mxu1 %v2458_v30  ;;  %v2772_v30 = vld [vmem:[%s4026_s14 + $0x74] sm:$0xf0] }
 0x361   :  { %1455 = vmatpush.bf16.msrb.mxu1 %v2442_v43 }
 0x383   :  { %v829_v49 = vpop.f32.mrf.mxu2 }
 0x384   :  { %v830_v50 = vadd.f32 %v829_v49, %v3161_v23  ;;  %v2511_v23 = vld [vmem:[%s4026_s14 + $0xf8] sm:$0xf0]  ;;  %v2765_v49 = vld [vmem:[%s4026_s14 + $0x44] sm:$0xf] }
 0x385   :  { %v2514_v58 = vor.u32 %v2786_v57, %v2511_v23 }
 0x386   :  { %v833_v51 = vpack.c.bf16 %v830_v50, %v830_v50 }
 0x388   :  { %910 = vmatmul.bf16.vlgmr.msra.gmra.mxu3 %v833_v51  ;;  %v2509_v51 = vld [vmem:[%s4026_s14 + $0xe8] sm:$0xf] }
 0x389   :  { %1477 = vmatpush.bf16.msra.mxu3 %v2514_v58 }
 0x38b   :  { %v831_v52 = vpop.f32.mrf.mxu2 }
 0x38c   :  { %v2502_v52 = vor.u32 %v2787_v42, %v2501_v41  ;;  %v2413_v42 = vld [vmem:[%s4026_s14 + $0x28] sm:$0xf] }
 0x38d   :  { %1478 = vmatpush.bf16.msra.mxu3 %v2498_v61 }
 0x391   :  { %1479 = vmatpush.bf16.msra.mxu3 %v2482_v0  ;;  %v2407_v0 = vld [vmem:[%s4026_s14 + $0x30] sm:$0xf0] }
 0x392   :  { %v2410_v4 = vor.u32 %v2761_v59, %v2407_v0 }
 0x395   :  { %1480 = vmatpush.bf16.msra.mxu3 %v2466_v3  ;;  %v2779_v3 = vld [vmem:[%s4026_s14 + $0xac] sm:$0xf0] }
 0x396   :  { %v2470_v11 = vor.u32 %v2779_v3, %v2469_v2 }
 0x398   :  { %1168 = vmatmul.bf16.vlgmr.msrb.gmra.mxu3 %v3628_v29 }
 0x399   :  { %1481 = vmatpush.bf16.msra.mxu3 %v2450_v10  ;;  %v2477_v10 = vld [vmem:[%s4026_s14 + $0xa8] sm:$0xf] }
 0x39a   :  { %v2478_v18 = vor.u32 %v2780_v13, %v2477_v10 }
 0x39d   :  { %1482 = vmatpush.bf16.msra.mxu3 %v2434_v16  ;;  %v2394_v16 = vor.u32 %v2757_v6, %v2391_v12 }
 0x3a1   :  { %1483 = vmatpush.bf16.msra.mxu3 %v2418_v24  ;;  %v2771_v24 = vld [vmem:[%s4026_s14 + $0x6c] sm:$0xf0] }
 0x3a2   :  { %v2438_v28 = vor.u32 %v2771_v24, %v2437_v22 }
 0x3a5   :  { %1484 = vmatpush.bf16.msra.mxu3 %v2402_v36  ;;  %v2422_v36 = vor.u32 %v2767_v33, %v2421_v32 }
 0x3a8   :  { %1485 = vmatmul.bf16.vlgmr.msra.gmra.mxu3 %v3291_v31 }
 0x3d8   :  { %v3665_v53 = vpop.f32.mrf.mxu0 }
 0x3d9   :  { %v3667_v54 = vpop.f32.mrf.mxu1  ;;  %v1131_v23 = vadd.f32 %v3665_v53, %v953_v45  ;;  %v2764_v45 = vld [vmem:[%s4026_s14 + $0x34] sm:$0xf0] }
 0x3da   :  { %v1157_v47 = vadd.f32 %v3667_v54, %v955_v34  ;;  %v2788_v54 = vld [vmem:[%s4026_s14 + $0xf4] sm:$0xf0]  ;;  %v2446_v34 = vor.u32 %v2772_v30, %v2445_v26 }
 0x3db   :  { %v2510_v61 = vor.u32 %v2788_v54, %v2509_v51  ;;  %v2760_v51 = vld [vmem:[%s4026_s14 + $0x14] sm:$0xf0] }
 0x3de   :  { %v3669_v55 = vpop.f32.mrf.mxu2 }
 0x3df   :  { %v1144_v50 = vadd.f32 %v3669_v55, %v954_v38  ;;  %v2783_v55 = vld [vmem:[%s4026_s14 + $0xcc] sm:$0xf0]  ;;  %v2405_v38 = vld [vmem:[%s4026_s14 + $0x20] sm:$0xf] }
 0x3e0   :  { %v1132_v40 = vpop.f32.mrf.mxu0  ;;  %v2406_v43 = vor.u32 %v2763_v39, %v2405_v38 }
 0x3e1   :  { %v1158_v44 = vpop.f32.mrf.mxu1  ;;  %v2423_v40 = vld [vmem:[%s4026_s14 + $0x50] sm:$0xf0]  ;;  %v1173_v60 = vpack.c.bf16 %v1144_v50, %v1131_v23  ;;  %v2397_v50 = vld [vmem:[%s4026_s14 + $0x8] sm:$0xf] }
 0x3e2   :  { %v2426_v57 = vor.u32 %v2765_v49, %v2423_v40  ;;  %v1558_v40 = vsel %vm715_vm1, %v3628_v29, 0 }
 0x3e3   :  { %v1202_v8 = vunpack.c.h.b16 %v1173_v60 }
 0x3e4   :  { %1456 = vmatpush.bf16.msrb.mxu1 %v2426_v57 }
 0x3e5   :  { %v1203_v17 = vpack.c.b16 %v1202_v8, %v1202_v8 }
 0x3e6   :  { %v1145_v56 = vpop.f32.mrf.mxu2 }
 0x3e7   :  { %v2485_v56 = vld [vmem:[%s4026_s14 + $0xc0] sm:$0xf] }
 0x3e8   :  { %v2486_v63 = vor.u32 %v2783_v55, %v2485_v56  ;;  %1457 = vmatpush.bf16.msrb.mxu1 %v2410_v4 }
 0x3ec   :  { %1458 = vmatpush.bf16.msrb.mxu1 %v2394_v16 }
 0x3ef   :  { %1459 = vmatmul.bf16.vlgmr.msrb.gmra.mxu1 %v3291_v31 }
 0x40b   :  { %v3701_v7 = vpop.f32.mrf.mxu3 }
 0x413   :  { %v913_v19 = vpop.f32.mrf.mxu3 }
 0x414   :  { %v2461_v19 = vld [vmem:[%s4026_s14 + $0x88] sm:$0xf] }
 0x415   :  { %v2462_v25 = vor.u32 %v2776_v21, %v2461_v19 }
 0x41b   :  { %v1169_v46 = vpop.f32.mrf.mxu3 }
 0x41c   :  { %v1170_v48 = vadd.f32 %v1169_v46, %v956_v35  ;;  %v2429_v35 = vld [vmem:[%s4026_s14 + $0x48] sm:$0xf]  ;;  %v2389_v46 = vld [vmem:[%s4026_s14] sm:$0xf] }
 0x41d   :  { %v2430_v41 = vor.u32 %v2768_v37, %v2429_v35 }
 0x41e   :  { %v1174_v44 = vpack.c.bf16 %v1170_v48, %v1157_v47  ;;  %v2759_v47 = vld [vmem:[%s4026_s14 + $0xc] sm:$0xf0]  ;;  %v2414_v48 = vor.u32 %v2764_v45, %v2413_v42 }
 0x41f   :  { %v2390_v49 = vor.u32 %v2759_v47, %v2389_v46 }
 0x420   :  { %v1206_v58 = vunpack.c.h.b16 %v1174_v44  ;;  %1182 = vmatpush.bf16.xpose.msra.mxu0 %v1174_v44 }
 0x422   :  { %v1207_v53 = vpack.c.b16 %v1206_v58, %v1206_v58 }
 0x423   :  { %v1171_v5 = vpop.f32.mrf.mxu3 }
 0x424   :  { %1216 = vmatpush.bf16.xpose.msrb.mxu2 %v1207_v53  ;;  %v1268_v53 = vld [vmem:[%s4028_s15] sm:$0xf] }
 0x425   :  { %v1273_v2 = vperm.slane %v1268_v53, 3  ;;  %v1270_v3 = vperm.slane %v1268_v53, 0  ;;  %v1271_v4 = vperm.slane %v1268_v53, 1  ;;  %v1272_v6 = vperm.slane %v1268_v53, 2  ;;  %v2792_v53 = vld [vmem:[%s4029_s12 + $0x18] sm:$0xff] }
 0x427   :  { %1183 = vmatmul.bf16.vlgmr.msra.gmra.mxu0 %v1173_v60 }
 0x428   :  { %1438 = vmatpush.bf16.msrb.mxu0 %v2502_v52  ;;  %v2398_v52 = vor.u32 %v2760_v51, %v2397_v50 }
 0x42b   :  { %1217 = vmatmul.bf16.vlgmr.msrb.gmra.mxu2 %v1203_v17  ;;  %v1486_v44 = vpop.f32.mrf.mxu3 }
 0x42c   :  { %1464 = vmatpush.bf16.msra.mxu2 %v2510_v61  ;;  %1439 = vmatpush.bf16.msrb.mxu0 %v2486_v63 }
 0x430   :  { %1465 = vmatpush.bf16.msra.mxu2 %v2494_v9  ;;  %1440 = vmatpush.bf16.msrb.mxu0 %v2470_v11  ;;  %v1487_v9 = vadd.f32 %v1486_v44, %v1273_v2  ;;  %v2790_v2 = vld [vmem:[%s4029_s12 + $0x8] sm:$0xff] }
 0x433   :  { %v1488_v57 = vpop.f32.mrf.mxu3 }
 0x434   :  { %1466 = vmatpush.bf16.msra.mxu2 %v2478_v18  ;;  %1441 = vmatpush.bf16.msrb.mxu0 %v2454_v20 }
 0x438   :  { %1467 = vmatpush.bf16.msra.mxu2 %v2462_v25  ;;  %1442 = vmatpush.bf16.msrb.mxu0 %v2438_v28 }
 0x43c   :  { %1468 = vmatpush.bf16.msra.mxu2 %v2446_v34  ;;  %1443 = vmatpush.bf16.msrb.mxu0 %v2422_v36 }
 0x440   :  { %1469 = vmatpush.bf16.msra.mxu2 %v2430_v41  ;;  %1444 = vmatpush.bf16.msrb.mxu0 %v2406_v43 }
 0x444   :  { %1470 = vmatpush.bf16.msra.mxu2 %v2414_v48  ;;  %1445 = vmatpush.bf16.msrb.mxu0 %v2390_v49 }
 0x447   :  { %1446 = vmatmul.bf16.vlgmr.msrb.gmra.mxu0 %v3291_v31 }
 0x448   :  { %1471 = vmatpush.bf16.msra.mxu2 %v2398_v52 }
 0x44b   :  { %1472 = vmatmul.bf16.vlgmr.msra.gmra.mxu2 %v3291_v31  ;;  %v2822_v31 = vld [vmem:[%s4025_s9] ss:$0 sm:$0xff] }
 0x44c   :  { %1567 = vmatpush.bf16.msrb.mxu2 %v1558_v40  ;;  %v912_v29 = vadd.f32 %v2822_v31, %v3701_v7  ;;  %v2795_v31 = vld [vmem:[%s4029_s12 + $0x30] sm:$0xff] }
 0x44e   :  { %v915_v1 = vmul.f32 0.5, %v912_v29  ;;  %v2794_v29 = vld [vmem:[%s4029_s12 + $0x28] sm:$0xff] }
 0x450   :  { %v3886_v5 = vmax.f32 %v915_v1, 0.0  ;;  %v2791_v1 = vld [vmem:[%s4029_s12 + $0x10] sm:$0xff] }
 0x452   :  { %v918_v7 = vpack.c.bf16 %v3886_v5, %v3886_v5 }
 0x454   :  { %v1662_v17 = vsel %vm715_vm1, %v918_v7, 0 }
 0x46c   :  { %v1460_v23 = vpop.f32.mrf.mxu1 }
 0x46d   :  { %v1461_v12 = vadd.f32 %v1460_v23, %v1271_v4 }
 0x474   :  { %v1462_v62 = vpop.f32.mrf.mxu1 }
 0x4a4   :  { %v1184_v54 = vpop.f32.mrf.mxu0 }
 0x4a5   :  { %v1188_v56 = vmul.f32 0.35355338, %v1184_v54 }
 0x4a7   :  { %v1189_v55 = vsel %vm346_vm0, %v1188_v56, -inf }
 0x4a8   :  { %1190 = vmax.xlane.f32.xlu2 %v1189_v55 }
 0x4ac   :  { %v1186_v58 = vpop.f32.mrf.mxu0 }
 0x4ae   :  { %v1218_v59 = vpop.f32.mrf.mxu2 }
 0x4af   :  { %v1222_v60 = vmul.f32 0.35355338, %v1218_v59 }
 0x4b1   :  { %v1223_v61 = vsel %vm346_vm0, %v1222_v60, -inf }
 0x4b2   :  { %1224 = vmax.xlane.f32.xlu0 %v1223_v61 }
 0x4b6   :  { %v1220_v63 = vpop.f32.mrf.mxu2 }
 0x4b7   :  { %v2796_v63 = vld [vmem:[%s4029_s12 + $0x38] sm:$0xff] }
 0x4b8   :  { %1642 = vmatpush.bf16.msrb.mxu3 %v2796_v63 }
 0x4bc   :  { %1643 = vmatpush.bf16.msrb.mxu3 %v2795_v31  ;;  %v2825_v31 = vld [vmem:[%s4036_s20] ss:$0 sm:$0xff] }
 0x4c0   :  { %1644 = vmatpush.bf16.msrb.mxu3 %v2794_v29 }
 0x4c4   :  { %v1447_v0 = vpop.f32.mrf.mxu0 }
 0x4c5   :  { %v1448_v11 = vadd.f32 %v1447_v0, %v1270_v3  ;;  %v2793_v0 = vld [vmem:[%s4029_s12 + $0x20] sm:$0xff] }
 0x4c6   :  { %1645 = vmatpush.bf16.msrb.mxu3 %v2793_v0  ;;  %v2789_v3 = vld [vmem:[%s4029_s12] sm:$0xff] }
 0x4c7   :  { %v1490_v15 = vpack.c.bf16 %v1461_v12, %v1448_v11  ;;  %v2802_v12 = vld [vmem:[%s4030_s16 + $0x28] sm:$0xff] }
 0x4c9   :  { %v1519_v19 = vunpack.c.h.b16 %v1490_v15 }
 0x4ca   :  { %1646 = vmatpush.bf16.msrb.mxu3 %v2792_v53 }
 0x4cb   :  { %v1520_v21 = vpack.c.b16 %v1519_v19, %v1519_v19  ;;  %v2800_v19 = vld [vmem:[%s4030_s16 + $0x18] sm:$0xff] }
 0x4cc   :  { %v1449_v8 = vpop.f32.mrf.mxu0 }
 0x4cd   :  { %v2804_v8 = vld [vmem:[%s4030_s16 + $0x38] sm:$0xff] }
 0x4ce   :  { %v1473_v10 = vpop.f32.mrf.mxu2  ;;  %1647 = vmatpush.bf16.msrb.mxu3 %v2791_v1 }
 0x4cf   :  { %v1474_v13 = vadd.f32 %v1473_v10, %v1272_v6  ;;  %v2812_v10 = vld [vmem:[%s4031_s18 + $0x38] sm:$0xff] }
 0x4d1   :  { %v1491_v14 = vpack.c.bf16 %v1487_v9, %v1474_v13  ;;  %v2803_v9 = vld [vmem:[%s4030_s16 + $0x30] sm:$0xff] }
 0x4d2   :  { %1648 = vmatpush.bf16.msrb.mxu3 %v2790_v2 }
 0x4d3   :  { %v1523_v16 = vunpack.c.h.b16 %v1491_v14  ;;  %1499 = vmatpush.bf16.xpose.msra.mxu0 %v1491_v14 }
 0x4d5   :  { %v1524_v18 = vpack.c.b16 %v1523_v16, %v1523_v16  ;;  %v2801_v16 = vld [vmem:[%s4030_s16 + $0x20] sm:$0xff] }
 0x4d6   :  { %v1475_v20 = vpop.f32.mrf.mxu2  ;;  %1649 = vmatpush.bf16.msrb.mxu3 %v2789_v3 }
 0x4d7   :  { %1533 = vmatpush.bf16.xpose.msra.mxu1 %v1524_v18  ;;  %v2799_v20 = vld [vmem:[%s4030_s16 + $0x10] sm:$0xff] }
 0x4da   :  { %1500 = vmatmul.bf16.vlgmr.msra.gmra.mxu0 %v1490_v15 }
 0x4db   :  { %1671 = vmatpush.bf16.msrb.mxu0 %v1662_v17 }
 0x4de   :  { %1534 = vmatmul.bf16.vlgmr.msra.gmra.mxu1 %v1520_v21  ;;  %v2798_v21 = vld [vmem:[%s4030_s16 + $0x8] sm:$0xff] }
 0x4df   :  { %1746 = vmatpush.bf16.msrb.mxu1 %v2804_v8  ;;  %1906 = vmatpush.bf16.msra.mxu0 %v2812_v10 }
 0x4e3   :  { %1747 = vmatpush.bf16.msrb.mxu1 %v2803_v9 }
 0x4e7   :  { %1748 = vmatpush.bf16.msrb.mxu1 %v2802_v12 }
 0x4eb   :  { %1749 = vmatpush.bf16.msrb.mxu1 %v2801_v16 }
 0x4ef   :  { %1750 = vmatpush.bf16.msrb.mxu1 %v2800_v19 }
 0x4f3   :  { %1751 = vmatpush.bf16.msrb.mxu1 %v2799_v20 }
 0x4f7   :  { %1752 = vmatpush.bf16.msrb.mxu1 %v2798_v21 }
 0x51b   :  { %v1191_v22 = vpop.xlane.xlu2 %1190 }
 0x51c   :  { %v1192_v24 = vsub.f32 %v1188_v56, %v1191_v22 }
 0x51e   :  { %v1193_v25 = vmul.f32 1.442695, %v1192_v24 }
 0x520   :  { %2842 = vpow2.f32 %v1193_v25 }
 0x525   :  { %v1225_v30 = vpop.xlane.xlu0 %1224 }
 0x526   :  { %v2843_v26 = vpop.eup %2842  ;;  %v1226_v32 = vsub.f32 %v1222_v60, %v1225_v30  ;;  %v2797_v30 = vld [vmem:[%s4030_s16] sm:$0xff] }
 0x527   :  { %v1195_v28 = vsel %vm346_vm0, %v2843_v26, 0.0  ;;  %1753 = vmatpush.bf16.msrb.mxu1 %v2797_v30 }
 0x528   :  { %1196 = vadd.xlane.f32.xlu0 %v1195_v28  ;;  %v1227_v33 = vmul.f32 1.442695, %v1226_v32  ;;  %v2811_v28 = vld [vmem:[%s4031_s18 + $0x30] sm:$0xff]  ;;  %v2810_v32 = vld [vmem:[%s4031_s18 + $0x28] sm:$0xff] }
 0x529   :  { %1907 = vmatpush.bf16.msra.mxu0 %v2811_v28 }
 0x52a   :  { %2844 = vpow2.f32 %v1227_v33  ;;  %v2808_v33 = vld [vmem:[%s4031_s18 + $0x18] sm:$0xff] }
 0x52d   :  { %1908 = vmatpush.bf16.msra.mxu0 %v2810_v32 }
 0x530   :  { %v2845_v41 = vpop.eup %2844 }
 0x531   :  { %v1229_v43 = vsel %vm346_vm0, %v2845_v41, 0.0 }
 0x557   :  { %v1501_v34 = vpop.f32.mrf.mxu0 }
 0x558   :  { %v1505_v35 = vmul.f32 0.35355338, %v1501_v34  ;;  %v2807_v34 = vld [vmem:[%s4031_s18 + $0x10] sm:$0xff] }
 0x55a   :  { %v1506_v36 = vsel %vm346_vm0, %v1505_v35, -inf }
 0x55b   :  { %v1535_v37 = vpop.f32.mrf.mxu1  ;;  %1507 = vmax.xlane.f32.xlu1 %v1506_v36  ;;  %v2805_v36 = vld [vmem:[%s4031_s18] sm:$0xff] }
 0x55c   :  { %v1539_v38 = vmul.f32 0.35355338, %v1535_v37  ;;  %v2820_v37 = vld [vmem:[%s4034_s19 + $0x38] sm:$0xff] }
 0x55d   :  { %1845 = vmatpush.bf16.msra.mxu2 %v2820_v37 }
 0x55e   :  { %v1540_v39 = vsel %vm346_vm0, %v1539_v38, -inf }
 0x55f   :  { %1541 = vmax.xlane.f32.xlu2 %v1540_v39  ;;  %v1503_v42 = vpop.f32.mrf.mxu0 }
 0x560   :  { %v2818_v42 = vld [vmem:[%s4034_s19 + $0x28] sm:$0xff] }
 0x563   :  { %1230 = vadd.xlane.f32.xlu1 %v1229_v43  ;;  %v1537_v45 = vpop.f32.mrf.mxu1 }
 0x564   :  { %v2817_v45 = vld [vmem:[%s4034_s19 + $0x20] sm:$0xff] }
 0x59b   :  { %v1197_v50 = vpop.xlane.xlu0 %1196 }
 0x5ce   :  { %v1508_v46 = vpop.xlane.xlu1 %1507 }
 0x5cf   :  { %v1509_v47 = vsub.f32 %v1505_v35, %v1508_v46  ;;  %v2806_v35 = vld [vmem:[%s4031_s18 + $0x8] sm:$0xff] }
 0x5d1   :  { %v1510_v48 = vmul.f32 1.442695, %v1509_v47  ;;  %v2816_v47 = vld [vmem:[%s4034_s19 + $0x18] sm:$0xff] }
 0x5d2   :  { %v1542_v49 = vpop.xlane.xlu2 %1541 }
 0x5d3   :  { %2846 = vpow2.f32 %v1510_v48  ;;  %v1543_v51 = vsub.f32 %v1539_v38, %v1542_v49  ;;  %v2819_v38 = vld [vmem:[%s4034_s19 + $0x30] sm:$0xff]  ;;  %v2823_v48 = vld [vmem:[%s4032_s13] ss:$0 sm:$0xff] }
 0x5d4   :  { %2848 = vrcp.f32 %v1197_v50  ;;  %1846 = vmatpush.bf16.msra.mxu2 %v2819_v38 }
 0x5d5   :  { %v1544_v52 = vmul.f32 1.442695, %v1543_v51 }
 0x5d6   :  { %v1231_v40 = vpop.xlane.xlu1 %1230 }
 0x5d7   :  { %2850 = vpow2.f32 %v1544_v52 }
 0x5d8   :  { %2852 = vrcp.f32 %v1231_v40  ;;  %1847 = vmatpush.bf16.msra.mxu2 %v2818_v42 }
 0x5d9   :  { %v2847_v44 = vpop.eup %2846 }
 0x5da   :  { %v1512_v54 = vsel %vm346_vm0, %v2847_v44, 0.0  ;;  %v2849_v56 = vpop.eup %2848 }
 0x5db   :  { %1513 = vadd.xlane.f32.xlu2 %v1512_v54  ;;  %v1199_v58 = vmul.f32 %v2849_v56, %v2843_v26  ;;  %v2814_v54 = vld [vmem:[%s4034_s19 + $0x8] sm:$0xff]  ;;  %v2813_v56 = vld [vmem:[%s4034_s19] sm:$0xff] }
 0x5dc   :  { %1848 = vmatpush.bf16.msra.mxu2 %v2817_v45 }
 0x5dd   :  { %v2851_v55 = vpop.eup %2850 }
 0x5de   :  { %v2853_v57 = vpop.eup %2852  ;;  %v1546_v23 = vsel %vm346_vm0, %v2851_v55, 0.0 }
 0x5df   :  { %v1233_v59 = vmul.f32 %v2853_v57, %v2845_v41  ;;  %1547 = vadd.xlane.f32.xlu0 %v1546_v23 }
 0x5e0   :  { %1849 = vmatpush.bf16.msra.mxu2 %v2816_v47 }
 0x5e1   :  { %v1234_v60 = vadd.f32 %v1233_v59, %v1199_v58 }
 0x5e3   :  { %v1235_v61 = vmul.f32 0.5, %v1234_v60 }
 0x5e5   :  { %v1553_v62 = vpack.c.bf16 %v1235_v61, %v1235_v61 }
 0x5e7   :  { %2515 = vmatmul.msk.bf16.vlgmr.msrb.gmra.mxu2 %vm346_vm0, %v1553_v62 }
 0x64e   :  { %v1514_v4 = vpop.xlane.xlu2 %1513 }
 0x64f   :  { %2854 = vrcp.f32 %v1514_v4 }
 0x652   :  { %v1548_v6 = vpop.xlane.xlu0 %1547 }
 0x653   :  { %2856 = vrcp.f32 %v1548_v6 }
 0x655   :  { %v2855_v11 = vpop.eup %2854 }
 0x656   :  { %v1516_v13 = vmul.f32 %v2855_v11, %v2847_v44 }
 0x659   :  { %v2857_v7 = vpop.eup %2856 }
 0x65a   :  { %v1550_v14 = vmul.f32 %v2857_v7, %v2851_v55  ;;  %v2824_v55 = vld [vmem:[%s4033_s17] ss:$0 sm:$0xff] }
 0x65c   :  { %v1551_v15 = vadd.f32 %v1550_v14, %v1516_v13 }
 0x65e   :  { %v1552_v17 = vmul.f32 0.5, %v1551_v15 }
 0x660   :  { %v1657_v18 = vpack.c.bf16 %v1552_v17, %v1552_v17 }
 0x662   :  { %2548 = vmatmul.msk.bf16.vlgmr.msrb.gmra.mxu0 %vm346_vm0, %v1657_v18 }
 0x66a   :  { %v1569_v22 = vpop.f32.mrf.mxu2 }
 0x66b   :  { %v1570_v24 = vadd.f32 %v1569_v22, %v3624_v27  ;;  %v2809_v27 = vld [vmem:[%s4031_s18 + $0x20] sm:$0xff] }
 0x66c   :  { %1909 = vmatpush.bf16.msra.mxu0 %v2809_v27 }
 0x66d   :  { %v1573_v25 = vpack.c.bf16 %v1570_v24, %v1570_v24 }
 0x66f   :  { %1650 = vmatmul.bf16.vlgmr.msrb.gmra.mxu3 %v1573_v25 }
 0x670   :  { %1910 = vmatpush.bf16.msra.mxu0 %v2808_v33 }
 0x672   :  { %v1571_v26 = vpop.f32.mrf.mxu2 }
 0x674   :  { %1911 = vmatpush.bf16.msra.mxu0 %v2807_v34 }
 0x678   :  { %1912 = vmatpush.bf16.msra.mxu0 %v2806_v35 }
 0x67c   :  { %1913 = vmatpush.bf16.msra.mxu0 %v2805_v36 }
 0x6df   :  { %v1673_v39 = vpop.f32.mrf.mxu0 }
 0x6e0   :  { %v1674_v41 = vadd.f32 %v1673_v39, %v3886_v5  ;;  %v2815_v5 = vld [vmem:[%s4034_s19 + $0x10] sm:$0xff] }
 0x6e1   :  { %1850 = vmatpush.bf16.msra.mxu2 %v2815_v5 }
 0x6e2   :  { %v1677_v43 = vpack.c.bf16 %v1674_v41, %v1674_v41 }
 0x6e4   :  { %1754 = vmatmul.bf16.vlgmr.msrb.gmra.mxu1 %v1677_v43 }
 0x6e5   :  { %1851 = vmatpush.bf16.msra.mxu2 %v2814_v54 }
 0x6e7   :  { %v1675_v46 = vpop.f32.mrf.mxu0 }
 0x6e9   :  { %1852 = vmatpush.bf16.msra.mxu2 %v2813_v56 }
 0x6f2   :  { %v1651_v49 = vpop.f32.mrf.mxu3 }
 0x6f3   :  { %v1652_v50 = vadd.f32 %v2823_v48, %v1651_v49 }
 0x6f5   :  { %v1655_v51 = vmul.f32 0.5, %v1652_v50 }
 0x6f7   :  { %v1656_v52 = vmax.f32 %v1655_v51, 0.0 }
 0x6f9   :  { %1761 = vst [vmem:[%s4035_s21] sm:$0xff] %v1656_v52  ;;  %v1763_v40 = vpack.c.bf16 %v1656_v52, %v1656_v52 }
 0x6fa   :  { %v1653_v44 = vpop.f32.mrf.mxu3 }
 0x6fb   :  { %1914 = vmatmul.bf16.vlgmr.msra.gmra.mxu0 %v1763_v40 }
 0x761   :  { %v1755_v57 = vpop.f32.mrf.mxu1 }
 0x762   :  { %v1756_v23 = vadd.f32 %v2824_v55, %v1755_v57 }
 0x764   :  { %v1759_v58 = vmul.f32 0.5, %v1756_v23 }
 0x766   :  { %v1760_v59 = vmax.f32 %v1759_v58, 0.0 }
 0x768   :  { %1762 = vst [vmem:[%s4037_s22] sm:$0xff] %v1760_v59  ;;  %v1780_v60 = vpack.c.bf16 %v1760_v59, %v1760_v59 }
 0x769   :  { %v1757_v61 = vpop.f32.mrf.mxu1 }
 0x76a   :  { %1853 = vmatmul.bf16.vlgmr.msra.gmra.mxu2 %v1780_v60 }
 0x778   :  { %v1915_v62 = vpop.f32.mrf.mxu0 }
 0x780   :  { %v1917_v63 = vpop.f32.mrf.mxu0 }
 0x7ed   :  { %v1854_v29 = vpop.f32.mrf.mxu2 }
 0x7ee   :  { %v1916_v0 = vadd.f32 %v1915_v62, %v1854_v29 }
 0x7f0   :  { %v1923_v53 = vadd.f32 %v2825_v31, %v1916_v0 }
 0x7f2   :  { %1924 = vst [vmem:[%s4038_s23] sm:$0xff] %v1923_v53 }
 0x7f5   :  { %v1856_v1 = vpop.f32.mrf.mxu2 }

</bundles_post_ra>
